<compile_context>
chip_gen: v6e
topology: v6e:2x2x1
jax: 0.10.0
libtpu: 0.0.40
codegen_flags: <defaults>
</compile_context>

<pallas_src>
import jax
import jax.numpy as jnp
from jax.experimental import pallas as pl
from jax.experimental.pallas import tpu as pltpu

IN_DIM = 22
HID = 120
PAD = 128           # lane-padded feature width
N_ENC = 8           # encoder Linear layers
N_DEC = 9           # decoder Linear layers
N_LAYERS = N_ENC + N_DEC  # 17 square layers in the packed slab


# --------------------------------------------------------------------------- #
# kernel
# --------------------------------------------------------------------------- #
def vae_kernel(x_ref, eps_ref, w_ref, b_ref, hw_ref, hb_ref,
               recon_ref, mu_ref, lv_ref,
               xpad_ref, epad_ref):
    zd = eps_ref.shape[1]

    # ---- lane-pad inputs inside the kernel (VMEM scratch, zero upper lanes) --
    xpad_ref[...] = jnp.zeros_like(xpad_ref)
    xpad_ref[:, :IN_DIM] = x_ref[...]
    epad_ref[...] = jnp.zeros_like(epad_ref)
    epad_ref[:, :zd] = eps_ref[...]

    # ---- encoder: 8 Linear layers, ReLU after the first 7 -------------------
    h = xpad_ref[...]                                            # (TB, 128) f32
    for i in range(N_ENC):
        w = w_ref[i].astype(jnp.float32)                         # bf16 -> f32
        h = jnp.dot(h, w, preferred_element_type=jnp.float32) + b_ref[i:i + 1, :]
        if i < N_ENC - 1:
            h = jnp.maximum(h, 0.0)

    # ---- fused mu / logvar head: one (128,256) matmul, split at lane 128 ----
    head = jnp.dot(h, hw_ref[...].astype(jnp.float32),
                   preferred_element_type=jnp.float32) + hb_ref[...]
    mu = head[:, :PAD]
    lv = head[:, PAD:]

    # ---- reparameterization: z = mu + eps * exp(0.5 * logvar) ---------------
    z = mu + epad_ref[...] * jnp.exp(0.5 * lv)

    # ---- decoder: 9 Linear layers, ReLU after the first 8 -------------------
    d = z
    for i in range(N_DEC):
        j = N_ENC + i
        w = w_ref[j].astype(jnp.float32)
        d = jnp.dot(d, w, preferred_element_type=jnp.float32) + b_ref[j:j + 1, :]
        if i < N_DEC - 1:
            d = jnp.maximum(d, 0.0)

    recon_ref[...] = d
    mu_ref[...] = mu
    lv_ref[...] = lv


# --------------------------------------------------------------------------- #
# parameter construction (deterministic, synthetic; matches torch init scheme)
# --------------------------------------------------------------------------- #
def _kaiming_uniform(key, fan_in, fan_out):
    # torch.nn.init.kaiming_uniform_ (a=0, fan_in): bound = sqrt(6 / fan_in)
    bound = (6.0 / fan_in) ** 0.5
    return jax.random.uniform(key, (fan_in, fan_out), jnp.float32, -bound, bound)


def _bias(key, fan_in, fan_out):
    # torch Linear default bias init: U(-1/sqrt(fan_in), 1/sqrt(fan_in))
    bound = 1.0 / (fan_in ** 0.5)
    return jax.random.uniform(key, (fan_out,), jnp.float32, -bound, bound)


def _pad_w(w):
    return jnp.zeros((PAD, PAD), jnp.float32).at[:w.shape[0], :w.shape[1]].set(w)


def _pad_b(b):
    return jnp.zeros((PAD,), jnp.float32).at[:b.shape[0]].set(b)


def make_vae_params(key, z_dim):
    enc_dims = [(IN_DIM, HID)] + [(HID, HID)] * 7                       # 8 layers
    dec_dims = [(z_dim, HID)] + [(HID, HID)] * 7 + [(HID, IN_DIM)]      # 9 layers

    keys = iter(jax.random.split(key, 2 * (len(enc_dims) + len(dec_dims) + 2)))

    w_rows, b_rows = [], []
    for fi, fo in enc_dims:
        w_rows.append(_pad_w(_kaiming_uniform(next(keys), fi, fo)))
        b_rows.append(_pad_b(_bias(next(keys), fi, fo)))

    mu_w = _kaiming_uniform(next(keys), HID, z_dim)
    mu_b = _bias(next(keys), HID, z_dim)
    lv_w = _kaiming_uniform(next(keys), HID, z_dim)
    lv_b = _bias(next(keys), HID, z_dim)

    head_w = jnp.zeros((PAD, 2 * PAD), jnp.float32)
    head_w = head_w.at[:HID, :z_dim].set(mu_w)
    head_w = head_w.at[:HID, PAD:PAD + z_dim].set(lv_w)
    head_b = jnp.zeros((1, 2 * PAD), jnp.float32)
    head_b = head_b.at[0, :z_dim].set(mu_b)
    head_b = head_b.at[0, PAD:PAD + z_dim].set(lv_b)

    for fi, fo in dec_dims:
        w_rows.append(_pad_w(_kaiming_uniform(next(keys), fi, fo)))
        b_rows.append(_pad_b(_bias(next(keys), fi, fo)))

    return {
        "z_dim": z_dim,
        "w": jnp.stack(w_rows).astype(jnp.bfloat16),   # (17, 128, 128) bf16
        "b": jnp.stack(b_rows),                        # (17, 128)      f32
        "head_w": head_w.astype(jnp.bfloat16),         # (128, 256)     bf16
        "head_b": head_b,                              # (1, 256)       f32
    }


# --------------------------------------------------------------------------- #
# wrapper
# --------------------------------------------------------------------------- #
def _round_up(n, m):
    return ((n + m - 1) // m) * m


def vae_forward(x, eps, params, block_batch=128):
    """x: (B, 22) float32, eps: (B, z_dim) float32 standard-normal noise."""
    x = x.astype(jnp.float32)
    eps = eps.astype(jnp.float32)
    B = x.shape[0]
    z_dim = eps.shape[1]

    tb = min(_round_up(block_batch, 8), _round_up(B, 8))
    Bp = _round_up(B, tb)
    if Bp != B:
        x = jnp.pad(x, ((0, Bp - B), (0, 0)))
        eps = jnp.pad(eps, ((0, Bp - B), (0, 0)))
    n_tiles = Bp // tb

    w, b, hw, hb = params["w"], params["b"], params["head_w"], params["head_b"]

    flops = 2 * Bp * PAD * PAD * N_LAYERS + 2 * Bp * PAD * (2 * PAD)
    bytes_accessed = (w.size * 2 + b.size * 4 + hw.size * 2 + hb.size * 4
                      + Bp * (IN_DIM + z_dim + 3 * PAD) * 4)

    grid_spec = pltpu.PrefetchScalarGridSpec(
        num_scalar_prefetch=0,
        grid=(n_tiles,),
        in_specs=[
            pl.BlockSpec((tb, IN_DIM), lambda i: (i, 0)),          # x
            pl.BlockSpec((tb, z_dim), lambda i: (i, 0)),           # eps
            pl.BlockSpec((N_LAYERS, PAD, PAD), lambda i: (0, 0, 0)),  # weight slab (resident)
            pl.BlockSpec((N_LAYERS, PAD), lambda i: (0, 0)),          # bias slab   (resident)
            pl.BlockSpec((PAD, 2 * PAD), lambda i: (0, 0)),           # fused head w
            pl.BlockSpec((1, 2 * PAD), lambda i: (0, 0)),             # fused head b
        ],
        out_specs=(
            pl.BlockSpec((tb, PAD), lambda i: (i, 0)),
            pl.BlockSpec((tb, PAD), lambda i: (i, 0)),
            pl.BlockSpec((tb, PAD), lambda i: (i, 0)),
        ),
        scratch_shapes=[
            pltpu.VMEM((tb, PAD), jnp.float32),   # lane-padded x
            pltpu.VMEM((tb, PAD), jnp.float32),   # lane-padded eps
        ],
    )

    recon_p, mu_p, lv_p = pl.pallas_call(
        vae_kernel,
        out_shape=(
            jax.ShapeDtypeStruct((Bp, PAD), jnp.float32),
            jax.ShapeDtypeStruct((Bp, PAD), jnp.float32),
            jax.ShapeDtypeStruct((Bp, PAD), jnp.float32),
        ),
        grid_spec=grid_spec,
        compiler_params=pltpu.CompilerParams(
            dimension_semantics=("parallel",)),
        cost_estimate=pl.CostEstimate(
            flops=flops, transcendentals=Bp * PAD, bytes_accessed=bytes_accessed),
    )(x, eps, w, b, hw, hb)

    return recon_p[:B, :IN_DIM], mu_p[:B, :z_dim], lv_p[:B, :z_dim]


# --------------------------------------------------------------------------- #
# pure-JAX reference (same packed/padded params) for correctness checking
# --------------------------------------------------------------------------- #
def vae_reference(x, eps, params):
    B = x.shape[0]
    z_dim = eps.shape[1]
    w = params["w"].astype(jnp.float32)
    b = params["b"]
    hw = params["head_w"].astype(jnp.float32)
    hb = params["head_b"]

    hp = jnp.zeros((B, PAD), jnp.float32).at[:, :IN_DIM].set(x)
    ep = jnp.zeros((B, PAD), jnp.float32).at[:, :z_dim].set(eps)

    def dot(a, m):
        return jnp.dot(a, m, precision=jax.lax.Precision.HIGHEST)

    h = hp
    for i in range(N_ENC):
        h = dot(h, w[i]) + b[i][None, :]
        if i < N_ENC - 1:
            h = jnp.maximum(h, 0.0)
    head = dot(h, hw) + hb
    mu, lv = head[:, :PAD], head[:, PAD:]
    z = mu + ep * jnp.exp(0.5 * lv)
    d = z
    for i in range(N_DEC):
        j = N_ENC + i
        d = dot(d, w[j]) + b[j][None, :]
        if i < N_DEC - 1:
            d = jnp.maximum(d, 0.0)
    return d[:, :IN_DIM], mu[:, :z_dim], lv[:, :z_dim]


# --------------------------------------------------------------------------- #
if __name__ == "__main__":
    import numpy as np

    key = jax.random.PRNGKey(0)
    k_param, k_x, k_eps, k_x2, k_eps2 = jax.random.split(key, 5)

    z_dim = 8
    params = make_vae_params(k_param, z_dim)

    # small batch (single tile)
    batch = 8
    x = jax.random.normal(k_x, (batch, IN_DIM), jnp.float32)
    eps = jax.random.normal(k_eps, (batch, z_dim), jnp.float32)
    recon, mu, logvar = vae_forward(x, eps, params)
    jax.block_until_ready((recon, mu, logvar))

    assert recon.shape == (batch, IN_DIM)
    assert mu.shape == (batch, z_dim)
    assert logvar.shape == (batch, z_dim)

    r_ref, m_ref, l_ref = vae_reference(x, eps, params)
    np.testing.assert_allclose(np.asarray(recon), np.asarray(r_ref), atol=5e-2, rtol=5e-2)
    np.testing.assert_allclose(np.asarray(mu), np.asarray(m_ref), atol=5e-2, rtol=5e-2)
    np.testing.assert_allclose(np.asarray(logvar), np.asarray(l_ref), atol=5e-2, rtol=5e-2)

    # larger, non-multiple-of-tile batch (exercises the batch grid + padding)
    batch2 = 200
    x2 = jax.random.normal(k_x2, (batch2, IN_DIM), jnp.float32)
    eps2 = jax.random.normal(k_eps2, (batch2, z_dim), jnp.float32)
    recon2, mu2, logvar2 = vae_forward(x2, eps2, params, block_batch=128)
    jax.block_until_ready((recon2, mu2, logvar2))
    r2_ref, m2_ref, l2_ref = vae_reference(x2, eps2, params)
    np.testing.assert_allclose(np.asarray(recon2), np.asarray(r2_ref), atol=5e-2, rtol=5e-2)
    np.testing.assert_allclose(np.asarray(mu2), np.asarray(m2_ref), atol=5e-2, rtol=5e-2)
    np.testing.assert_allclose(np.asarray(logvar2), np.asarray(l2_ref), atol=5e-2, rtol=5e-2)

    print("KERNEL_OK")
</pallas_src>

<mosaic_0001>
module attributes {stable_mosaic.version = 11 : i64} {
  func.func @vae_kernel(%arg0: i32, %arg1: memref<8x22xf32, #tpu.memory_space<vmem>>, %arg2: memref<8x8xf32, #tpu.memory_space<vmem>>, %arg3: memref<17x128x128xbf16, #tpu.memory_space<vmem>>, %arg4: memref<17x128xf32, #tpu.memory_space<vmem>>, %arg5: memref<128x256xbf16, #tpu.memory_space<vmem>>, %arg6: memref<1x256xf32, #tpu.memory_space<vmem>>, %arg7: memref<8x128xf32, #tpu.memory_space<vmem>>, %arg8: memref<8x128xf32, #tpu.memory_space<vmem>>, %arg9: memref<8x128xf32, #tpu.memory_space<vmem>>, %arg10: memref<8x128xf32, #tpu.memory_space<vmem>>, %arg11: memref<8x128xf32, #tpu.memory_space<vmem>>) attributes {dimension_semantics = [#tpu.dimension_semantics<parallel>], iteration_bounds = array<i64: 1>, scalar_prefetch = 0 : i64, scratch_operands = 2 : i64, tpu.core_type = #tpu.core_type<tc>, window_params = [{transform_indices = @transform_0, window_bounds = array<i64: 8, 22>}, {transform_indices = @transform_1, window_bounds = array<i64: 8, 8>}, {pipeline_mode = #tpu.pipeline_mode<synchronous>, transform_indices = @transform_2, window_bounds = array<i64: 17, 128, 128>}, {pipeline_mode = #tpu.pipeline_mode<synchronous>, transform_indices = @transform_3, window_bounds = array<i64: 17, 128>}, {pipeline_mode = #tpu.pipeline_mode<synchronous>, transform_indices = @transform_4, window_bounds = array<i64: 128, 256>}, {pipeline_mode = #tpu.pipeline_mode<synchronous>, transform_indices = @transform_5, window_bounds = array<i64: 1, 256>}, {transform_indices = @transform_6, window_bounds = array<i64: 8, 128>}, {transform_indices = @transform_7, window_bounds = array<i64: 8, 128>}, {transform_indices = @transform_8, window_bounds = array<i64: 8, 128>}]} {
    %cst = arith.constant 0.000000e+00 : f32
    %0 = vector.broadcast %cst : f32 to vector<8x128xf32>
    %c0 = arith.constant 0 : index
    %c0_0 = arith.constant 0 : index
    %1 = vector.load %arg10[%c0, %c0_0] : memref<8x128xf32, #tpu.memory_space<vmem>>, vector<8x128xf32>
    tpu.vector_store %arg10[%c0, %c0_0], %0 {strides = array<i32>} : memref<8x128xf32, #tpu.memory_space<vmem>>, vector<8x128xf32>,
    %c0_1 = arith.constant 0 : index
    %c0_2 = arith.constant 0 : index
    %2 = vector.load %arg1[%c0_1, %c0_2] : memref<8x22xf32, #tpu.memory_space<vmem>>, vector<8x22xf32>
    %c0_3 = arith.constant 0 : index
    %c0_4 = arith.constant 0 : index
    %3 = vector.load %arg10[%c0_3, %c0_4] : memref<8x128xf32, #tpu.memory_space<vmem>>, vector<8x22xf32>
    tpu.vector_store %arg10[%c0_3, %c0_4], %2 {strides = array<i32>} : memref<8x128xf32, #tpu.memory_space<vmem>>, vector<8x22xf32>,
    %cst_5 = arith.constant 0.000000e+00 : f32
    %4 = vector.broadcast %cst_5 : f32 to vector<8x128xf32>
    %c0_6 = arith.constant 0 : index
    %c0_7 = arith.constant 0 : index
    %5 = vector.load %arg11[%c0_6, %c0_7] : memref<8x128xf32, #tpu.memory_space<vmem>>, vector<8x128xf32>
    tpu.vector_store %arg11[%c0_6, %c0_7], %4 {strides = array<i32>} : memref<8x128xf32, #tpu.memory_space<vmem>>, vector<8x128xf32>,
    %c0_8 = arith.constant 0 : index
    %c0_9 = arith.constant 0 : index
    %6 = vector.load %arg2[%c0_8, %c0_9] : memref<8x8xf32, #tpu.memory_space<vmem>>, vector<8x8xf32>
    %c0_10 = arith.constant 0 : index
    %c0_11 = arith.constant 0 : index
    %7 = vector.load %arg11[%c0_10, %c0_11] : memref<8x128xf32, #tpu.memory_space<vmem>>, vector<8x8xf32>
    tpu.vector_store %arg11[%c0_10, %c0_11], %6 {strides = array<i32>} : memref<8x128xf32, #tpu.memory_space<vmem>>, vector<8x8xf32>,
    %c0_12 = arith.constant 0 : index
    %c0_13 = arith.constant 0 : index
    %8 = vector.load %arg10[%c0_12, %c0_13] : memref<8x128xf32, #tpu.memory_space<vmem>>, vector<8x128xf32>
    %c0_14 = arith.constant 0 : index
    %c0_15 = arith.constant 0 : index
    %c0_16 = arith.constant 0 : index
    %9 = vector.load %arg3[%c0_14, %c0_15, %c0_16] : memref<17x128x128xbf16, #tpu.memory_space<vmem>>, vector<1x128x128xbf16>
    %10 = vector.shape_cast %9 : vector<1x128x128xbf16> to vector<128x128xbf16>
    %11 = arith.extf %10 : vector<128x128xbf16> to vector<128x128xf32>
    %cst_17 = arith.constant dense<0.000000e+00> : vector<8x128xf32>
    %12 = tpu.matmul %8, %11, %cst_17 {dimension_numbers = #tpu.dot_dimension_numbers<[1], [0], [0], [1], [0, 0, 1, 1], [], []>} : vector<8x128xf32>, vector<128x128xf32>, vector<8x128xf32> -> vector<8x128xf32>
    %c0_18 = arith.constant 0 : index
    %c0_19 = arith.constant 0 : index
    %13 = vector.load %arg4[%c0_18, %c0_19] : memref<17x128xf32, #tpu.memory_space<vmem>>, vector<1x128xf32>
    %14 = vector.broadcast %13 : vector<1x128xf32> to vector<8x128xf32>
    %15 = arith.addf %12, %14 : vector<8x128xf32>
    %cst_20 = arith.constant 0.000000e+00 : f32
    %16 = vector.broadcast %cst_20 : f32 to vector<8x128xf32>
    %17 = arith.maximumf %15, %16 : vector<8x128xf32>
    %c1 = arith.constant 1 : index
    %c0_21 = arith.constant 0 : index
    %c0_22 = arith.constant 0 : index
    %18 = vector.load %arg3[%c1, %c0_21, %c0_22] : memref<17x128x128xbf16, #tpu.memory_space<vmem>>, vector<1x128x128xbf16>
    %19 = vector.shape_cast %18 : vector<1x128x128xbf16> to vector<128x128xbf16>
    %20 = arith.extf %19 : vector<128x128xbf16> to vector<128x128xf32>
    %cst_23 = arith.constant dense<0.000000e+00> : vector<8x128xf32>
    %21 = tpu.matmul %17, %20, %cst_23 {dimension_numbers = #tpu.dot_dimension_numbers<[1], [0], [0], [1], [0, 0, 1, 1], [], []>} : vector<8x128xf32>, vector<128x128xf32>, vector<8x128xf32> -> vector<8x128xf32>
    %c1_24 = arith.constant 1 : index
    %c0_25 = arith.constant 0 : index
    %22 = vector.load %arg4[%c1_24, %c0_25] : memref<17x128xf32, #tpu.memory_space<vmem>>, vector<1x128xf32>
    %23 = vector.broadcast %22 : vector<1x128xf32> to vector<8x128xf32>
    %24 = arith.addf %21, %23 : vector<8x128xf32>
    %cst_26 = arith.constant 0.000000e+00 : f32
    %25 = vector.broadcast %cst_26 : f32 to vector<8x128xf32>
    %26 = arith.maximumf %24, %25 : vector<8x128xf32>
    %c2 = arith.constant 2 : index
    %c0_27 = arith.constant 0 : index
    %c0_28 = arith.constant 0 : index
    %27 = vector.load %arg3[%c2, %c0_27, %c0_28] : memref<17x128x128xbf16, #tpu.memory_space<vmem>>, vector<1x128x128xbf16>
    %28 = vector.shape_cast %27 : vector<1x128x128xbf16> to vector<128x128xbf16>
    %29 = arith.extf %28 : vector<128x128xbf16> to vector<128x128xf32>
    %cst_29 = arith.constant dense<0.000000e+00> : vector<8x128xf32>
    %30 = tpu.matmul %26, %29, %cst_29 {dimension_numbers = #tpu.dot_dimension_numbers<[1], [0], [0], [1], [0, 0, 1, 1], [], []>} : vector<8x128xf32>, vector<128x128xf32>, vector<8x128xf32> -> vector<8x128xf32>
    %c2_30 = arith.constant 2 : index
    %c0_31 = arith.constant 0 : index
    %31 = vector.load %arg4[%c2_30, %c0_31] : memref<17x128xf32, #tpu.memory_space<vmem>>, vector<1x128xf32>
    %32 = vector.broadcast %31 : vector<1x128xf32> to vector<8x128xf32>
    %33 = arith.addf %30, %32 : vector<8x128xf32>
    %cst_32 = arith.constant 0.000000e+00 : f32
    %34 = vector.broadcast %cst_32 : f32 to vector<8x128xf32>
    %35 = arith.maximumf %33, %34 : vector<8x128xf32>
    %c3 = arith.constant 3 : index
    %c0_33 = arith.constant 0 : index
    %c0_34 = arith.constant 0 : index
    %36 = vector.load %arg3[%c3, %c0_33, %c0_34] : memref<17x128x128xbf16, #tpu.memory_space<vmem>>, vector<1x128x128xbf16>
    %37 = vector.shape_cast %36 : vector<1x128x128xbf16> to vector<128x128xbf16>
    %38 = arith.extf %37 : vector<128x128xbf16> to vector<128x128xf32>
    %cst_35 = arith.constant dense<0.000000e+00> : vector<8x128xf32>
    %39 = tpu.matmul %35, %38, %cst_35 {dimension_numbers = #tpu.dot_dimension_numbers<[1], [0], [0], [1], [0, 0, 1, 1], [], []>} : vector<8x128xf32>, vector<128x128xf32>, vector<8x128xf32> -> vector<8x128xf32>
    %c3_36 = arith.constant 3 : index
    %c0_37 = arith.constant 0 : index
    %40 = vector.load %arg4[%c3_36, %c0_37] : memref<17x128xf32, #tpu.memory_space<vmem>>, vector<1x128xf32>
    %41 = vector.broadcast %40 : vector<1x128xf32> to vector<8x128xf32>
    %42 = arith.addf %39, %41 : vector<8x128xf32>
    %cst_38 = arith.constant 0.000000e+00 : f32
    %43 = vector.broadcast %cst_38 : f32 to vector<8x128xf32>
    %44 = arith.maximumf %42, %43 : vector<8x128xf32>
    %c4 = arith.constant 4 : index
    %c0_39 = arith.constant 0 : index
    %c0_40 = arith.constant 0 : index
    %45 = vector.load %arg3[%c4, %c0_39, %c0_40] : memref<17x128x128xbf16, #tpu.memory_space<vmem>>, vector<1x128x128xbf16>
    %46 = vector.shape_cast %45 : vector<1x128x128xbf16> to vector<128x128xbf16>
    %47 = arith.extf %46 : vector<128x128xbf16> to vector<128x128xf32>
    %cst_41 = arith.constant dense<0.000000e+00> : vector<8x128xf32>
    %48 = tpu.matmul %44, %47, %cst_41 {dimension_numbers = #tpu.dot_dimension_numbers<[1], [0], [0], [1], [0, 0, 1, 1], [], []>} : vector<8x128xf32>, vector<128x128xf32>, vector<8x128xf32> -> vector<8x128xf32>
    %c4_42 = arith.constant 4 : index
    %c0_43 = arith.constant 0 : index
    %49 = vector.load %arg4[%c4_42, %c0_43] : memref<17x128xf32, #tpu.memory_space<vmem>>, vector<1x128xf32>
    %50 = vector.broadcast %49 : vector<1x128xf32> to vector<8x128xf32>
    %51 = arith.addf %48, %50 : vector<8x128xf32>
    %cst_44 = arith.constant 0.000000e+00 : f32
    %52 = vector.broadcast %cst_44 : f32 to vector<8x128xf32>
    %53 = arith.maximumf %51, %52 : vector<8x128xf32>
    %c5 = arith.constant 5 : index
    %c0_45 = arith.constant 0 : index
    %c0_46 = arith.constant 0 : index
    %54 = vector.load %arg3[%c5, %c0_45, %c0_46] : memref<17x128x128xbf16, #tpu.memory_space<vmem>>, vector<1x128x128xbf16>
    %55 = vector.shape_cast %54 : vector<1x128x128xbf16> to vector<128x128xbf16>
    %56 = arith.extf %55 : vector<128x128xbf16> to vector<128x128xf32>
    %cst_47 = arith.constant dense<0.000000e+00> : vector<8x128xf32>
    %57 = tpu.matmul %53, %56, %cst_47 {dimension_numbers = #tpu.dot_dimension_numbers<[1], [0], [0], [1], [0, 0, 1, 1], [], []>} : vector<8x128xf32>, vector<128x128xf32>, vector<8x128xf32> -> vector<8x128xf32>
    %c5_48 = arith.constant 5 : index
    %c0_49 = arith.constant 0 : index
    %58 = vector.load %arg4[%c5_48, %c0_49] : memref<17x128xf32, #tpu.memory_space<vmem>>, vector<1x128xf32>
    %59 = vector.broadcast %58 : vector<1x128xf32> to vector<8x128xf32>
    %60 = arith.addf %57, %59 : vector<8x128xf32>
    %cst_50 = arith.constant 0.000000e+00 : f32
    %61 = vector.broadcast %cst_50 : f32 to vector<8x128xf32>
    %62 = arith.maximumf %60, %61 : vector<8x128xf32>
    %c6 = arith.constant 6 : index
    %c0_51 = arith.constant 0 : index
    %c0_52 = arith.constant 0 : index
    %63 = vector.load %arg3[%c6, %c0_51, %c0_52] : memref<17x128x128xbf16, #tpu.memory_space<vmem>>, vector<1x128x128xbf16>
    %64 = vector.shape_cast %63 : vector<1x128x128xbf16> to vector<128x128xbf16>
    %65 = arith.extf %64 : vector<128x128xbf16> to vector<128x128xf32>
    %cst_53 = arith.constant dense<0.000000e+00> : vector<8x128xf32>
    %66 = tpu.matmul %62, %65, %cst_53 {dimension_numbers = #tpu.dot_dimension_numbers<[1], [0], [0], [1], [0, 0, 1, 1], [], []>} : vector<8x128xf32>, vector<128x128xf32>, vector<8x128xf32> -> vector<8x128xf32>
    %c6_54 = arith.constant 6 : index
    %c0_55 = arith.constant 0 : index
    %67 = vector.load %arg4[%c6_54, %c0_55] : memref<17x128xf32, #tpu.memory_space<vmem>>, vector<1x128xf32>
    %68 = vector.broadcast %67 : vector<1x128xf32> to vector<8x128xf32>
    %69 = arith.addf %66, %68 : vector<8x128xf32>
    %cst_56 = arith.constant 0.000000e+00 : f32
    %70 = vector.broadcast %cst_56 : f32 to vector<8x128xf32>
    %71 = arith.maximumf %69, %70 : vector<8x128xf32>
    %c7 = arith.constant 7 : index
    %c0_57 = arith.constant 0 : index
    %c0_58 = arith.constant 0 : index
    %72 = vector.load %arg3[%c7, %c0_57, %c0_58] : memref<17x128x128xbf16, #tpu.memory_space<vmem>>, vector<1x128x128xbf16>
    %73 = vector.shape_cast %72 : vector<1x128x128xbf16> to vector<128x128xbf16>
    %74 = arith.extf %73 : vector<128x128xbf16> to vector<128x128xf32>
    %cst_59 = arith.constant dense<0.000000e+00> : vector<8x128xf32>
    %75 = tpu.matmul %71, %74, %cst_59 {dimension_numbers = #tpu.dot_dimension_numbers<[1], [0], [0], [1], [0, 0, 1, 1], [], []>} : vector<8x128xf32>, vector<128x128xf32>, vector<8x128xf32> -> vector<8x128xf32>
    %c7_60 = arith.constant 7 : index
    %c0_61 = arith.constant 0 : index
    %76 = vector.load %arg4[%c7_60, %c0_61] : memref<17x128xf32, #tpu.memory_space<vmem>>, vector<1x128xf32>
    %77 = vector.broadcast %76 : vector<1x128xf32> to vector<8x128xf32>
    %78 = arith.addf %75, %77 : vector<8x128xf32>
    %c0_62 = arith.constant 0 : index
    %c0_63 = arith.constant 0 : index
    %79 = vector.load %arg5[%c0_62, %c0_63] : memref<128x256xbf16, #tpu.memory_space<vmem>>, vector<128x256xbf16>
    %80 = arith.extf %79 : vector<128x256xbf16> to vector<128x256xf32>
    %cst_64 = arith.constant dense<0.000000e+00> : vector<8x256xf32>
    %81 = tpu.matmul %78, %80, %cst_64 {dimension_numbers = #tpu.dot_dimension_numbers<[1], [0], [0], [1], [0, 0, 1, 1], [], []>} : vector<8x128xf32>, vector<128x256xf32>, vector<8x256xf32> -> vector<8x256xf32>
    %c0_65 = arith.constant 0 : index
    %c0_66 = arith.constant 0 : index
    %82 = vector.load %arg6[%c0_65, %c0_66] : memref<1x256xf32, #tpu.memory_space<vmem>>, vector<1x256xf32>
    %83 = vector.broadcast %82 : vector<1x256xf32> to vector<8x256xf32>
    %84 = arith.addf %81, %83 : vector<8x256xf32>
    %85 = vector.extract_strided_slice %84 {offsets = [0, 0], sizes = [8, 128], strides = [1, 1]} : vector<8x256xf32> to vector<8x128xf32>
    %86 = vector.extract_strided_slice %84 {offsets = [0, 128], sizes = [8, 128], strides = [1, 1]} : vector<8x256xf32> to vector<8x128xf32>
    %c0_67 = arith.constant 0 : index
    %c0_68 = arith.constant 0 : index
    %87 = vector.load %arg11[%c0_67, %c0_68] : memref<8x128xf32, #tpu.memory_space<vmem>>, vector<8x128xf32>
    %cst_69 = arith.constant 5.000000e-01 : f32
    %88 = vector.broadcast %cst_69 : f32 to vector<8x128xf32>
    %89 = arith.mulf %88, %86 : vector<8x128xf32>
    %90 = math.exp %89 : vector<8x128xf32>
    %91 = arith.mulf %87, %90 : vector<8x128xf32>
    %92 = arith.addf %85, %91 : vector<8x128xf32>
    %c8 = arith.constant 8 : index
    %c0_70 = arith.constant 0 : index
    %c0_71 = arith.constant 0 : index
    %93 = vector.load %arg3[%c8, %c0_70, %c0_71] : memref<17x128x128xbf16, #tpu.memory_space<vmem>>, vector<1x128x128xbf16>
    %94 = vector.shape_cast %93 : vector<1x128x128xbf16> to vector<128x128xbf16>
    %95 = arith.extf %94 : vector<128x128xbf16> to vector<128x128xf32>
    %cst_72 = arith.constant dense<0.000000e+00> : vector<8x128xf32>
    %96 = tpu.matmul %92, %95, %cst_72 {dimension_numbers = #tpu.dot_dimension_numbers<[1], [0], [0], [1], [0, 0, 1, 1], [], []>} : vector<8x128xf32>, vector<128x128xf32>, vector<8x128xf32> -> vector<8x128xf32>
    %c8_73 = arith.constant 8 : index
    %c0_74 = arith.constant 0 : index
    %97 = vector.load %arg4[%c8_73, %c0_74] : memref<17x128xf32, #tpu.memory_space<vmem>>, vector<1x128xf32>
    %98 = vector.broadcast %97 : vector<1x128xf32> to vector<8x128xf32>
    %99 = arith.addf %96, %98 : vector<8x128xf32>
    %cst_75 = arith.constant 0.000000e+00 : f32
    %100 = vector.broadcast %cst_75 : f32 to vector<8x128xf32>
    %101 = arith.maximumf %99, %100 : vector<8x128xf32>
    %c9 = arith.constant 9 : index
    %c0_76 = arith.constant 0 : index
    %c0_77 = arith.constant 0 : index
    %102 = vector.load %arg3[%c9, %c0_76, %c0_77] : memref<17x128x128xbf16, #tpu.memory_space<vmem>>, vector<1x128x128xbf16>
    %103 = vector.shape_cast %102 : vector<1x128x128xbf16> to vector<128x128xbf16>
    %104 = arith.extf %103 : vector<128x128xbf16> to vector<128x128xf32>
    %cst_78 = arith.constant dense<0.000000e+00> : vector<8x128xf32>
    %105 = tpu.matmul %101, %104, %cst_78 {dimension_numbers = #tpu.dot_dimension_numbers<[1], [0], [0], [1], [0, 0, 1, 1], [], []>} : vector<8x128xf32>, vector<128x128xf32>, vector<8x128xf32> -> vector<8x128xf32>
    %c9_79 = arith.constant 9 : index
    %c0_80 = arith.constant 0 : index
    %106 = vector.load %arg4[%c9_79, %c0_80] : memref<17x128xf32, #tpu.memory_space<vmem>>, vector<1x128xf32>
    %107 = vector.broadcast %106 : vector<1x128xf32> to vector<8x128xf32>
    %108 = arith.addf %105, %107 : vector<8x128xf32>
    %cst_81 = arith.constant 0.000000e+00 : f32
    %109 = vector.broadcast %cst_81 : f32 to vector<8x128xf32>
    %110 = arith.maximumf %108, %109 : vector<8x128xf32>
    %c10 = arith.constant 10 : index
    %c0_82 = arith.constant 0 : index
    %c0_83 = arith.constant 0 : index
    %111 = vector.load %arg3[%c10, %c0_82, %c0_83] : memref<17x128x128xbf16, #tpu.memory_space<vmem>>, vector<1x128x128xbf16>
    %112 = vector.shape_cast %111 : vector<1x128x128xbf16> to vector<128x128xbf16>
    %113 = arith.extf %112 : vector<128x128xbf16> to vector<128x128xf32>
    %cst_84 = arith.constant dense<0.000000e+00> : vector<8x128xf32>
    %114 = tpu.matmul %110, %113, %cst_84 {dimension_numbers = #tpu.dot_dimension_numbers<[1], [0], [0], [1], [0, 0, 1, 1], [], []>} : vector<8x128xf32>, vector<128x128xf32>, vector<8x128xf32> -> vector<8x128xf32>
    %c10_85 = arith.constant 10 : index
    %c0_86 = arith.constant 0 : index
    %115 = vector.load %arg4[%c10_85, %c0_86] : memref<17x128xf32, #tpu.memory_space<vmem>>, vector<1x128xf32>
    %116 = vector.broadcast %115 : vector<1x128xf32> to vector<8x128xf32>
    %117 = arith.addf %114, %116 : vector<8x128xf32>
    %cst_87 = arith.constant 0.000000e+00 : f32
    %118 = vector.broadcast %cst_87 : f32 to vector<8x128xf32>
    %119 = arith.maximumf %117, %118 : vector<8x128xf32>
    %c11 = arith.constant 11 : index
    %c0_88 = arith.constant 0 : index
    %c0_89 = arith.constant 0 : index
    %120 = vector.load %arg3[%c11, %c0_88, %c0_89] : memref<17x128x128xbf16, #tpu.memory_space<vmem>>, vector<1x128x128xbf16>
    %121 = vector.shape_cast %120 : vector<1x128x128xbf16> to vector<128x128xbf16>
    %122 = arith.extf %121 : vector<128x128xbf16> to vector<128x128xf32>
    %cst_90 = arith.constant dense<0.000000e+00> : vector<8x128xf32>
    %123 = tpu.matmul %119, %122, %cst_90 {dimension_numbers = #tpu.dot_dimension_numbers<[1], [0], [0], [1], [0, 0, 1, 1], [], []>} : vector<8x128xf32>, vector<128x128xf32>, vector<8x128xf32> -> vector<8x128xf32>
    %c11_91 = arith.constant 11 : index
    %c0_92 = arith.constant 0 : index
    %124 = vector.load %arg4[%c11_91, %c0_92] : memref<17x128xf32, #tpu.memory_space<vmem>>, vector<1x128xf32>
    %125 = vector.broadcast %124 : vector<1x128xf32> to vector<8x128xf32>
    %126 = arith.addf %123, %125 : vector<8x128xf32>
    %cst_93 = arith.constant 0.000000e+00 : f32
    %127 = vector.broadcast %cst_93 : f32 to vector<8x128xf32>
    %128 = arith.maximumf %126, %127 : vector<8x128xf32>
    %c12 = arith.constant 12 : index
    %c0_94 = arith.constant 0 : index
    %c0_95 = arith.constant 0 : index
    %129 = vector.load %arg3[%c12, %c0_94, %c0_95] : memref<17x128x128xbf16, #tpu.memory_space<vmem>>, vector<1x128x128xbf16>
    %130 = vector.shape_cast %129 : vector<1x128x128xbf16> to vector<128x128xbf16>
    %131 = arith.extf %130 : vector<128x128xbf16> to vector<128x128xf32>
    %cst_96 = arith.constant dense<0.000000e+00> : vector<8x128xf32>
    %132 = tpu.matmul %128, %131, %cst_96 {dimension_numbers = #tpu.dot_dimension_numbers<[1], [0], [0], [1], [0, 0, 1, 1], [], []>} : vector<8x128xf32>, vector<128x128xf32>, vector<8x128xf32> -> vector<8x128xf32>
    %c12_97 = arith.constant 12 : index
    %c0_98 = arith.constant 0 : index
    %133 = vector.load %arg4[%c12_97, %c0_98] : memref<17x128xf32, #tpu.memory_space<vmem>>, vector<1x128xf32>
    %134 = vector.broadcast %133 : vector<1x128xf32> to vector<8x128xf32>
    %135 = arith.addf %132, %134 : vector<8x128xf32>
    %cst_99 = arith.constant 0.000000e+00 : f32
    %136 = vector.broadcast %cst_99 : f32 to vector<8x128xf32>
    %137 = arith.maximumf %135, %136 : vector<8x128xf32>
    %c13 = arith.constant 13 : index
    %c0_100 = arith.constant 0 : index
    %c0_101 = arith.constant 0 : index
    %138 = vector.load %arg3[%c13, %c0_100, %c0_101] : memref<17x128x128xbf16, #tpu.memory_space<vmem>>, vector<1x128x128xbf16>
    %139 = vector.shape_cast %138 : vector<1x128x128xbf16> to vector<128x128xbf16>
    %140 = arith.extf %139 : vector<128x128xbf16> to vector<128x128xf32>
    %cst_102 = arith.constant dense<0.000000e+00> : vector<8x128xf32>
    %141 = tpu.matmul %137, %140, %cst_102 {dimension_numbers = #tpu.dot_dimension_numbers<[1], [0], [0], [1], [0, 0, 1, 1], [], []>} : vector<8x128xf32>, vector<128x128xf32>, vector<8x128xf32> -> vector<8x128xf32>
    %c13_103 = arith.constant 13 : index
    %c0_104 = arith.constant 0 : index
    %142 = vector.load %arg4[%c13_103, %c0_104] : memref<17x128xf32, #tpu.memory_space<vmem>>, vector<1x128xf32>
    %143 = vector.broadcast %142 : vector<1x128xf32> to vector<8x128xf32>
    %144 = arith.addf %141, %143 : vector<8x128xf32>
    %cst_105 = arith.constant 0.000000e+00 : f32
    %145 = vector.broadcast %cst_105 : f32 to vector<8x128xf32>
    %146 = arith.maximumf %144, %145 : vector<8x128xf32>
    %c14 = arith.constant 14 : index
    %c0_106 = arith.constant 0 : index
    %c0_107 = arith.constant 0 : index
    %147 = vector.load %arg3[%c14, %c0_106, %c0_107] : memref<17x128x128xbf16, #tpu.memory_space<vmem>>, vector<1x128x128xbf16>
    %148 = vector.shape_cast %147 : vector<1x128x128xbf16> to vector<128x128xbf16>
    %149 = arith.extf %148 : vector<128x128xbf16> to vector<128x128xf32>
    %cst_108 = arith.constant dense<0.000000e+00> : vector<8x128xf32>
    %150 = tpu.matmul %146, %149, %cst_108 {dimension_numbers = #tpu.dot_dimension_numbers<[1], [0], [0], [1], [0, 0, 1, 1], [], []>} : vector<8x128xf32>, vector<128x128xf32>, vector<8x128xf32> -> vector<8x128xf32>
    %c14_109 = arith.constant 14 : index
    %c0_110 = arith.constant 0 : index
    %151 = vector.load %arg4[%c14_109, %c0_110] : memref<17x128xf32, #tpu.memory_space<vmem>>, vector<1x128xf32>
    %152 = vector.broadcast %151 : vector<1x128xf32> to vector<8x128xf32>
    %153 = arith.addf %150, %152 : vector<8x128xf32>
    %cst_111 = arith.constant 0.000000e+00 : f32
    %154 = vector.broadcast %cst_111 : f32 to vector<8x128xf32>
    %155 = arith.maximumf %153, %154 : vector<8x128xf32>
    %c15 = arith.constant 15 : index
    %c0_112 = arith.constant 0 : index
    %c0_113 = arith.constant 0 : index
    %156 = vector.load %arg3[%c15, %c0_112, %c0_113] : memref<17x128x128xbf16, #tpu.memory_space<vmem>>, vector<1x128x128xbf16>
    %157 = vector.shape_cast %156 : vector<1x128x128xbf16> to vector<128x128xbf16>
    %158 = arith.extf %157 : vector<128x128xbf16> to vector<128x128xf32>
    %cst_114 = arith.constant dense<0.000000e+00> : vector<8x128xf32>
    %159 = tpu.matmul %155, %158, %cst_114 {dimension_numbers = #tpu.dot_dimension_numbers<[1], [0], [0], [1], [0, 0, 1, 1], [], []>} : vector<8x128xf32>, vector<128x128xf32>, vector<8x128xf32> -> vector<8x128xf32>
    %c15_115 = arith.constant 15 : index
    %c0_116 = arith.constant 0 : index
    %160 = vector.load %arg4[%c15_115, %c0_116] : memref<17x128xf32, #tpu.memory_space<vmem>>, vector<1x128xf32>
    %161 = vector.broadcast %160 : vector<1x128xf32> to vector<8x128xf32>
    %162 = arith.addf %159, %161 : vector<8x128xf32>
    %cst_117 = arith.constant 0.000000e+00 : f32
    %163 = vector.broadcast %cst_117 : f32 to vector<8x128xf32>
    %164 = arith.maximumf %162, %163 : vector<8x128xf32>
    %c16 = arith.constant 16 : index
    %c0_118 = arith.constant 0 : index
    %c0_119 = arith.constant 0 : index
    %165 = vector.load %arg3[%c16, %c0_118, %c0_119] : memref<17x128x128xbf16, #tpu.memory_space<vmem>>, vector<1x128x128xbf16>
    %166 = vector.shape_cast %165 : vector<1x128x128xbf16> to vector<128x128xbf16>
    %167 = arith.extf %166 : vector<128x128xbf16> to vector<128x128xf32>
    %cst_120 = arith.constant dense<0.000000e+00> : vector<8x128xf32>
    %168 = tpu.matmul %164, %167, %cst_120 {dimension_numbers = #tpu.dot_dimension_numbers<[1], [0], [0], [1], [0, 0, 1, 1], [], []>} : vector<8x128xf32>, vector<128x128xf32>, vector<8x128xf32> -> vector<8x128xf32>
    %c16_121 = arith.constant 16 : index
    %c0_122 = arith.constant 0 : index
    %169 = vector.load %arg4[%c16_121, %c0_122] : memref<17x128xf32, #tpu.memory_space<vmem>>, vector<1x128xf32>
    %170 = vector.broadcast %169 : vector<1x128xf32> to vector<8x128xf32>
    %171 = arith.addf %168, %170 : vector<8x128xf32>
    %c0_123 = arith.constant 0 : index
    %c0_124 = arith.constant 0 : index
    %172 = vector.load %arg7[%c0_123, %c0_124] : memref<8x128xf32, #tpu.memory_space<vmem>>, vector<8x128xf32>
    tpu.vector_store %arg7[%c0_123, %c0_124], %171 {strides = array<i32>} : memref<8x128xf32, #tpu.memory_space<vmem>>, vector<8x128xf32>,
    %c0_125 = arith.constant 0 : index
    %c0_126 = arith.constant 0 : index
    %173 = vector.load %arg8[%c0_125, %c0_126] : memref<8x128xf32, #tpu.memory_space<vmem>>, vector<8x128xf32>
    tpu.vector_store %arg8[%c0_125, %c0_126], %85 {strides = array<i32>} : memref<8x128xf32, #tpu.memory_space<vmem>>, vector<8x128xf32>,
    %c0_127 = arith.constant 0 : index
    %c0_128 = arith.constant 0 : index
    %174 = vector.load %arg9[%c0_127, %c0_128] : memref<8x128xf32, #tpu.memory_space<vmem>>, vector<8x128xf32>
    tpu.vector_store %arg9[%c0_127, %c0_128], %86 {strides = array<i32>} : memref<8x128xf32, #tpu.memory_space<vmem>>, vector<8x128xf32>,
    return
  }
  func.func @transform_0(%arg0: i32) -> (i32, i32) {
    %c0_i32 = arith.constant 0 : i32
    %c0_i32_0 = arith.constant 0 : i32
    return %arg0, %c0_i32 : i32, i32
  }
  func.func @transform_1(%arg0: i32) -> (i32, i32) {
    %c0_i32 = arith.constant 0 : i32
    %c0_i32_0 = arith.constant 0 : i32
    return %arg0, %c0_i32 : i32, i32
  }
  func.func @transform_2(%arg0: i32) -> (i32, i32, i32) {
    %c0_i32 = arith.constant 0 : i32
    %c0_i32_0 = arith.constant 0 : i32
    %c0_i32_1 = arith.constant 0 : i32
    %c0_i32_2 = arith.constant 0 : i32
    return %c0_i32, %c0_i32_0, %c0_i32_1 : i32, i32, i32
  }
  func.func @transform_3(%arg0: i32) -> (i32, i32) {
    %c0_i32 = arith.constant 0 : i32
    %c0_i32_0 = arith.constant 0 : i32
    %c0_i32_1 = arith.constant 0 : i32
    return %c0_i32, %c0_i32_0 : i32, i32
  }
  func.func @transform_4(%arg0: i32) -> (i32, i32) {
    %c0_i32 = arith.constant 0 : i32
    %c0_i32_0 = arith.constant 0 : i32
    %c0_i32_1 = arith.constant 0 : i32
    return %c0_i32, %c0_i32_0 : i32, i32
  }
  func.func @transform_5(%arg0: i32) -> (i32, i32) {
    %c0_i32 = arith.constant 0 : i32
    %c0_i32_0 = arith.constant 0 : i32
    %c0_i32_1 = arith.constant 0 : i32
    return %c0_i32, %c0_i32_0 : i32, i32
  }
  func.func @transform_6(%arg0: i32) -> (i32, i32) {
    %c0_i32 = arith.constant 0 : i32
    %c0_i32_0 = arith.constant 0 : i32
    return %arg0, %c0_i32 : i32, i32
  }
  func.func @transform_7(%arg0: i32) -> (i32, i32) {
    %c0_i32 = arith.constant 0 : i32
    %c0_i32_0 = arith.constant 0 : i32
    return %arg0, %c0_i32 : i32, i32
  }
  func.func @transform_8(%arg0: i32) -> (i32, i32) {
    %c0_i32 = arith.constant 0 : i32
    %c0_i32_0 = arith.constant 0 : i32
    return %arg0, %c0_i32 : i32, i32
  }
}

</mosaic_0001>

<bundles_post_ra>
// kernel: tpu_custom_call.1
= control target key start
LH: loop header
LB: loop body
LE: loop exit
PB: predicated region body
PF: predicated region fallthrough
CT: control target
= control target key end

     0   :  { %14 = vsyncpa [#allocation5], 0  ;;  %s4289_s0 = inlined_call_operand.hbm [shape: f32[8,22], index: 0, kind: input, shape index: {}]   ;;  %s4290_s1 = inlined_call_operand.hbm [shape: f32[8,8], index: 1, kind: input, shape index: {}]   ;;  %s4291_s2 = inlined_call_operand.hbm [shape: bf16[17,128,128], index: 2, kind: input, shape index: {}]   ;;  %s4292_s3 = inlined_call_operand.hbm [shape: f32[17,128], index: 3, kind: input, shape index: {}]   ;;  %s4293_s4 = inlined_call_operand.hbm [shape: bf16[128,256], index: 4, kind: input, shape index: {}]   ;;  %s4294_s5 = inlined_call_operand.vmem [shape: f32[1,256], index: 5, kind: input, shape index: {}]   ;;  %s4295_s6 = inlined_call_operand.hbm [shape: f32[8,128], index: 6, kind: output, shape index: {0}]   ;;  %s4296_s7 = inlined_call_operand.hbm [shape: f32[8,128], index: 7, kind: output, shape index: {1}]   ;;  %s4297_s8 = inlined_call_operand.hbm [shape: f32[8,128], index: 8, kind: output, shape index: {2}]  }
   0x1   :  { %15 = vsyncpa [#allocation8], 0 }
   0x2   :  { %16 = vsyncpa [#allocation11], 0 }
   0x3   :  { %17 = vsyncpa [#allocation6], 0 }
   0x4   :  { %18 = vsyncpa [#allocation15], 0  ;;  %s3886_s27 = smov [#allocation7]   ;;  %s3887_s29 = smov [#allocation10]  }
   0x5   :  { %s35_s28 = sshll.u32 %s3886_s27, 4  ;;  %s56_s30 = sshll.u32 %s3887_s29, 4  ;;  %s36_s28 = int_to_ptr.vmem [resolvable:$true] %s35_s28  ;;  %s57_s30 = int_to_ptr.vmem [resolvable:$true] %s56_s30 }
   0x6   :  { %s3724_s9 = scalar_lea.vmem %s36_s28, 128  ;;  %p3729_p1 = scmp.lt.s32.totalorder %s36_s28, %s36_s28 }
   0x7   :  { %p3725_p0 = scmp.ne.s32.totalorder %s36_s28, %s3724_s9  ;;  %p3730_p2 = scmp.lt.s32.totalorder %s3724_s9, %s3724_s9 }
   0x9   :  { %p3731_p3 = por %p3730_p2, %p3729_p1 }
   0xb   :  { %p3732_p4 = pnand %p3731_p3, %p3725_p0 }
   0xd   :  { %3735 = shalt.err (!%p3732_p4)
}
   0xe   :  { %38 = dma.hbm_to_vmem [thread:$0]  %s4290_s1, 128, %s36_s28, [#allocation8]  }
   0xf   :  { %s3744_s12 = scalar_lea.vmem %s57_s30, 384  ;;  %p3749_p6 = scmp.lt.s32.totalorder %s57_s30, %s57_s30 }
  0x10   :  { %p3745_p5 = scmp.ne.s32.totalorder %s57_s30, %s3744_s12  ;;  %p3750_p7 = scmp.lt.s32.totalorder %s3744_s12, %s3744_s12 }
  0x12   :  { %p3751_p8 = por %p3750_p7, %p3749_p6 }
  0x14   :  { %p3752_p9 = pnand %p3751_p8, %p3745_p5 }
  0x16   :  { %3755 = shalt.err (!%p3752_p9)
}
  0x17   :  { %s3888_s13 = smov 128   ;;  %s3889_s14 = smov 8  }
  0x18   :  { %62 = dma.hbm_to_vmem [thread:$0]  %s4292_s3, 384, %s57_s30, [#allocation11], %s3888_s13, %s3888_s13, %s3889_s14  }
  0x19   :  { %s3890_s17 = smov [#allocation4]   ;;  %s3891_s19 = smov [#allocation9]  }
  0x1a   :  { %s25_s18 = sshll.u32 %s3890_s17, 4  ;;  %s44_s1 = sshll.u32 %s3891_s19, 4  ;;  %s26_s18 = int_to_ptr.vmem [resolvable:$true] %s25_s18  ;;  %s45_s1 = int_to_ptr.vmem [resolvable:$true] %s44_s1 }
  0x1b   :  { %s3764_s20 = scalar_lea.vmem %s26_s18, 128  ;;  %p3769_p11 = scmp.lt.s32.totalorder %s26_s18, %s26_s18 }
  0x1c   :  { %p3765_p10 = scmp.ne.s32.totalorder %s26_s18, %s3764_s20  ;;  %p3770_p12 = scmp.lt.s32.totalorder %s3764_s20, %s3764_s20 }
  0x1e   :  { %p3771_p13 = por %p3770_p12, %p3769_p11 }
  0x20   :  { %p3772_p0 = pnand %p3771_p13, %p3765_p10 }
  0x22   :  { %3775 = shalt.err (!%p3772_p0)
}
  0x23   :  { %28 = dma.hbm_to_vmem [thread:$0]  %s4289_s0, 128, %s26_s18, [#allocation5]  }
  0x24   :  { %s3784_s23 = scalar_lea.vmem %s45_s1, 17408  ;;  %p3789_p2 = scmp.lt.s32.totalorder %s45_s1, %s45_s1 }
  0x25   :  { %p3785_p1 = scmp.ne.s32.totalorder %s45_s1, %s3784_s23  ;;  %p3790_p3 = scmp.lt.s32.totalorder %s3784_s23, %s3784_s23 }
  0x27   :  { %p3791_p4 = por %p3790_p3, %p3789_p2 }
  0x29   :  { %p3792_p5 = pnand %p3791_p4, %p3785_p1 }
  0x2b   :  { %3795 = shalt.err (!%p3792_p5)
}
  0x2c   :  { %s3892_s3 = smov 64   ;;  %s3893_s24 = smov 4  }
  0x2d   :  { %50 = dma.hbm_to_vmem [thread:$0]  %s4291_s2, 17408, %s45_s1, [#allocation8], %s3892_s3, %s3892_s3, %s3893_s24  }
  0x2e   :  { %s3894_s27 = smov [#allocation12]  }
  0x2f   :  { %s68_s28 = sshll.u32 %s3894_s27, 4  ;;  %s69_s28 = int_to_ptr.vmem [resolvable:$true] %s68_s28 }
  0x30   :  { %s3804_s29 = scalar_lea.vmem %s69_s28, 2048  ;;  %p3809_p7 = scmp.lt.s32.totalorder %s69_s28, %s69_s28 }
  0x31   :  { %p3805_p6 = scmp.ne.s32.totalorder %s69_s28, %s3804_s29  ;;  %p3810_p8 = scmp.lt.s32.totalorder %s3804_s29, %s3804_s29 }
  0x33   :  { %p3811_p9 = por %p3810_p8, %p3809_p7 }
  0x35   :  { %p3812_p10 = pnand %p3811_p9, %p3805_p6 }
  0x37   :  { %3815 = shalt.err (!%p3812_p10)
}
  0x38   :  { %74 = dma.hbm_to_vmem [thread:$0]  %s4293_s4, 2048, %s69_s28, [#allocation11], %s3888_s13, %s3888_s13, %s3889_s14  }
  0x39   :  { %3876 = dma.done.wait [#allocation5], 128  }
  0x3a   :  { %3877 = vsyncadd [#allocation5], 4294967168 }
  0x3b   :  { %3878 = dma.done.wait [#allocation8], 17536  }
  0x3c   :  { %3879 = vsyncadd [#allocation8], 4294949760 }
  0x3d   :  { %3880 = dma.done.wait [#allocation11], 2432  }
  0x3e   :  { %3881 = vsyncadd [#allocation11], 4294964864  ;;  %v3895_v0 = vmov 0.0   ;;  %vm3896_vm0 = vmmov 0   ;;  %v2702_v1 = vld [vmem:[#allocation9 + $0x38] sm:$0xff]   ;;  %v2701_v2 = vld [vmem:[#allocation9 + $0x30] sm:$0xff]  }
  0x3f   :  { %3104 = vmatprep.subr.mxu0 %v3895_v0  ;;  %92 = vst [vmem:[#allocation2] sm:$0xff] %v3895_v0  ;;  %96 = vst [vmem:[#allocation3] sm:$0xff] %v3895_v0  ;;  %3136 = vmatprep.mubr.msk.f32.mxu0 %vm3896_vm0, %v3895_v0  ;;  %vm94_vm1 = vcmask 179200   ;;  %v2182_v3 = vunpack.c.l.bf16 %v2702_v1  ;;  %v2183_v4 = vunpack.c.h.bf16 %v2702_v1  ;;  %v93_v5 = vld [vmem:[#allocation4] sm:$0xff]  ;;  %v2179_v6 = vunpack.c.h.bf16 %v2701_v2  ;;  %v2709_v7 = vld [vmem:[#allocation9 + $0x78] sm:$0xff]  }
  0x40   :  { %3139 = vmatprep.subr.mxu1 %v3895_v0  ;;  %3171 = vmatprep.mubr.msk.f32.mxu1 %vm3896_vm0, %v3895_v0  ;;  %95 = vst.msk [vmem:[#allocation2] sm:$0xff] %vm94_vm1, %v93_v5  ;;  %v2700_v8 = vld [vmem:[#allocation9 + $0x28] sm:$0xff]   ;;  %v2708_v9 = vld [vmem:[#allocation9 + $0x70] sm:$0xff]   ;;  %v2178_v10 = vunpack.c.l.bf16 %v2701_v2  ;;  %v2214_v11 = vunpack.c.l.bf16 %v2709_v7  ;;  %v2215_v12 = vunpack.c.h.bf16 %v2709_v7  ;;  %v2699_v15 = vld [vmem:[#allocation9 + $0x20] sm:$0xff]   ;;  %vm98_vm2 = vcmask 64512  }
  0x41   :  { %3105 = vmatpush3.msra.mxu0 %v2183_v4  ;;  %v2175_v13 = vunpack.c.h.bf16 %v2700_v8  ;;  %v2211_v14 = vunpack.c.h.bf16 %v2708_v9  ;;  %v2707_v16 = vld [vmem:[#allocation9 + $0x68] sm:$0xff]   ;;  %v2174_v17 = vunpack.c.l.bf16 %v2700_v8  ;;  %v2210_v18 = vunpack.c.l.bf16 %v2708_v9  ;;  %v2698_v21 = vld [vmem:[#allocation9 + $0x18] sm:$0xff]   ;;  %v2706_v22 = vld [vmem:[#allocation9 + $0x60] sm:$0xff]  }
  0x42   :  { %3106 = vmatprep.subr.mxu0 %v3895_v0  ;;  %3140 = vmatpush3.msra.mxu1 %v2215_v12  ;;  %v2171_v19 = vunpack.c.h.bf16 %v2699_v15  ;;  %v2207_v20 = vunpack.c.h.bf16 %v2707_v16  ;;  %v2170_v23 = vunpack.c.l.bf16 %v2699_v15  ;;  %v2206_v24 = vunpack.c.l.bf16 %v2707_v16  ;;  %v2697_v27 = vld [vmem:[#allocation9 + $0x10] sm:$0xff]   ;;  %v2705_v28 = vld [vmem:[#allocation9 + $0x58] sm:$0xff]   ;;  %v2696_v33 = vld [vmem:[#allocation9 + $0x8] sm:$0xff]  }
  0x43   :  { %3107 = vmatpush3.msra.mxu0 %v2182_v3  ;;  %3141 = vmatprep.subr.mxu1 %v3895_v0  ;;  %v2167_v25 = vunpack.c.h.bf16 %v2698_v21  ;;  %v2203_v26 = vunpack.c.h.bf16 %v2706_v22  ;;  %v2166_v29 = vunpack.c.l.bf16 %v2698_v21  ;;  %v2202_v30 = vunpack.c.l.bf16 %v2706_v22  ;;  %v2704_v34 = vld [vmem:[#allocation9 + $0x50] sm:$0xff]   ;;  %v2153_v39 = vld [vmem:[#allocation9] sm:$0xff]   ;;  %v2703_v40 = vld [vmem:[#allocation9 + $0x48] sm:$0xff]  }
  0x44   :  { %3108 = vmatprep.subr.mxu0 %v3895_v0  ;;  %3142 = vmatpush3.msra.mxu1 %v2214_v11  ;;  %v2163_v31 = vunpack.c.h.bf16 %v2697_v27  ;;  %v2199_v32 = vunpack.c.h.bf16 %v2705_v28  ;;  %v2162_v35 = vunpack.c.l.bf16 %v2697_v27  ;;  %v2198_v36 = vunpack.c.l.bf16 %v2705_v28  ;;  %v2185_v48 = vld [vmem:[#allocation9 + $0x40] sm:$0xff]   ;;  %v2716_v51 = vld [vmem:[#allocation9 + $0xb8] sm:$0xff]   ;;  %v2715_v52 = vld [vmem:[#allocation9 + $0xb0] sm:$0xff]  }
  0x45   :  { %3109 = vmatpush3.msra.mxu0 %v2179_v6  ;;  %3143 = vmatprep.subr.mxu1 %v3895_v0  ;;  %v2159_v37 = vunpack.c.h.bf16 %v2696_v33  ;;  %v2195_v38 = vunpack.c.h.bf16 %v2704_v34  ;;  %v2158_v41 = vunpack.c.l.bf16 %v2696_v33  ;;  %v2194_v42 = vunpack.c.l.bf16 %v2704_v34  ;;  %v2714_v56 = vld [vmem:[#allocation9 + $0xa8] sm:$0xff]   ;;  %v2713_v59 = vld [vmem:[#allocation9 + $0xa0] sm:$0xff]   ;;  %v2712_v62 = vld [vmem:[#allocation9 + $0x98] sm:$0xff]  }
  0x46   :  { %3110 = vmatprep.subr.mxu0 %v3895_v0  ;;  %3144 = vmatpush3.msra.mxu1 %v2211_v14  ;;  %v2155_v43 = vunpack.c.h.bf16 %v2153_v39  ;;  %v2191_v44 = vunpack.c.h.bf16 %v2703_v40  ;;  %v2154_v45 = vunpack.c.l.bf16 %v2153_v39  ;;  %v2190_v47 = vunpack.c.l.bf16 %v2703_v40  ;;  %v2711_v2 = vld [vmem:[#allocation9 + $0x90] sm:$0xff]   ;;  %v2710_v5 = vld [vmem:[#allocation9 + $0x88] sm:$0xff]   ;;  %v2135_v8 = vld [vmem:[#allocation10] ss:$0 sm:$0xff] }
  0x47   :  { %3111 = vmatpush3.msra.mxu0 %v2178_v10  ;;  %3145 = vmatprep.subr.mxu1 %v3895_v0  ;;  %v100_v46 = vld [vmem:[#allocation2] sm:$0xff]  ;;  %v2187_v49 = vunpack.c.h.bf16 %v2185_v48  ;;  %v2186_v50 = vunpack.c.l.bf16 %v2185_v48  ;;  %v2247_v53 = vunpack.c.h.bf16 %v2716_v51  ;;  %v2246_v54 = vunpack.c.l.bf16 %v2716_v51  ;;  %v2721_v22 = vld [vmem:[#allocation9 + $0xe8] sm:$0xff]   ;;  %v2719_v28 = vld [vmem:[#allocation9 + $0xd8] sm:$0xff]  }
  0x48   :  { %3112 = vmatprep.subr.mxu0 %v3895_v0  ;;  %3146 = vmatpush3.msra.mxu1 %v2210_v18  ;;  %v2243_v55 = vunpack.c.h.bf16 %v2715_v52  ;;  %v2242_v57 = vunpack.c.l.bf16 %v2715_v52  ;;  %v2239_v58 = vunpack.c.h.bf16 %v2714_v56  ;;  %v2238_v60 = vunpack.c.l.bf16 %v2714_v56  ;;  %v2217_v14 = vld [vmem:[#allocation9 + $0x80] sm:$0xff]   ;;  %v2722_v18 = vld [vmem:[#allocation9 + $0xf0] sm:$0xff]   ;;  %v2717_v34 = vld [vmem:[#allocation9 + $0xc8] sm:$0xff]  }
  0x49   :  { %3113 = vmatpush3.msra.mxu0 %v2175_v13  ;;  %3147 = vmatprep.subr.mxu1 %v3895_v0  ;;  %v2235_v61 = vunpack.c.h.bf16 %v2713_v59  ;;  %v2234_v63 = vunpack.c.l.bf16 %v2713_v59  ;;  %v2231_v1 = vunpack.c.h.bf16 %v2712_v62  ;;  %v2230_v3 = vunpack.c.l.bf16 %v2712_v62  ;;  %v2728_v51 = vld [vmem:[#allocation9 + $0x128] sm:$0xff]  }
  0x4a   :  { %3114 = vmatprep.subr.mxu0 %v3895_v0  ;;  %3148 = vmatpush3.msra.mxu1 %v2207_v20  ;;  %v2227_v4 = vunpack.c.h.bf16 %v2711_v2  ;;  %v2226_v6 = vunpack.c.l.bf16 %v2711_v2  ;;  %v2223_v7 = vunpack.c.h.bf16 %v2710_v5  ;;  %v2222_v13 = vunpack.c.l.bf16 %v2710_v5 }
  0x4b   :  { %3115 = vmatpush3.msra.mxu0 %v2174_v17  ;;  %3149 = vmatprep.subr.mxu1 %v3895_v0  ;;  %v2219_v15 = vunpack.c.h.bf16 %v2217_v14  ;;  %v2218_v16 = vunpack.c.l.bf16 %v2217_v14  ;;  %v2723_v17 = vld [vmem:[#allocation9 + $0xf8] sm:$0xff]   ;;  %v2275_v21 = vunpack.c.h.bf16 %v2722_v18 }
  0x4c   :  { %3116 = vmatprep.subr.mxu0 %v3895_v0  ;;  %3150 = vmatpush3.msra.mxu1 %v2206_v24  ;;  %v2278_v20 = vunpack.c.l.bf16 %v2723_v17  ;;  %v2271_v24 = vunpack.c.h.bf16 %v2721_v22 }
  0x4d   :  { %3117 = vmatpush3.msra.mxu0 %v2171_v19  ;;  %3151 = vmatprep.subr.mxu1 %v3895_v0  ;;  %v2279_v19 = vunpack.c.h.bf16 %v2723_v17  ;;  %v2735_v17 = vld [vmem:[#allocation9 + $0x168] sm:$0xff]  }
  0x4e   :  { %3118 = vmatprep.subr.mxu0 %v3895_v0  ;;  %3152 = vmatpush3.msra.mxu1 %v2203_v26  ;;  %v2270_v26 = vunpack.c.l.bf16 %v2721_v22 }
  0x4f   :  { %3119 = vmatpush3.msra.mxu0 %v2170_v23  ;;  %3153 = vmatprep.subr.mxu1 %v3895_v0  ;;  %v2274_v23 = vunpack.c.l.bf16 %v2722_v18 }
  0x50   :  { %3120 = vmatprep.subr.mxu0 %v3895_v0  ;;  %3154 = vmatpush3.msra.mxu1 %v2202_v30  ;;  %v2263_v30 = vunpack.c.h.bf16 %v2719_v28 }
  0x51   :  { %3121 = vmatpush3.msra.mxu0 %v2167_v25  ;;  %3155 = vmatprep.subr.mxu1 %v3895_v0  ;;  %v2720_v25 = vld [vmem:[#allocation9 + $0xe0] sm:$0xff]  }
  0x52   :  { %3122 = vmatprep.subr.mxu0 %v3895_v0  ;;  %3156 = vmatpush3.msra.mxu1 %v2199_v32  ;;  %v2267_v27 = vunpack.c.h.bf16 %v2720_v25  ;;  %v2262_v32 = vunpack.c.l.bf16 %v2719_v28 }
  0x53   :  { %3123 = vmatpush3.msra.mxu0 %v2166_v29  ;;  %3157 = vmatprep.subr.mxu1 %v3895_v0  ;;  %v2266_v29 = vunpack.c.l.bf16 %v2720_v25 }
  0x54   :  { %3124 = vmatprep.subr.mxu0 %v3895_v0  ;;  %3158 = vmatpush3.msra.mxu1 %v2198_v36  ;;  %v2255_v36 = vunpack.c.h.bf16 %v2717_v34 }
  0x55   :  { %3125 = vmatpush3.msra.mxu0 %v2163_v31  ;;  %3159 = vmatprep.subr.mxu1 %v3895_v0  ;;  %v2718_v31 = vld [vmem:[#allocation9 + $0xd0] sm:$0xff]  }
  0x56   :  { %3126 = vmatprep.subr.mxu0 %v3895_v0  ;;  %3160 = vmatpush3.msra.mxu1 %v2195_v38  ;;  %v2259_v33 = vunpack.c.h.bf16 %v2718_v31 }
  0x57   :  { %3127 = vmatpush3.msra.mxu0 %v2162_v35  ;;  %3161 = vmatprep.subr.mxu1 %v3895_v0  ;;  %v2258_v35 = vunpack.c.l.bf16 %v2718_v31 }
  0x58   :  { %3128 = vmatprep.subr.mxu0 %v3895_v0  ;;  %3162 = vmatpush3.msra.mxu1 %v2194_v42  ;;  %v2254_v42 = vunpack.c.l.bf16 %v2717_v34 }
  0x59   :  { %3129 = vmatpush3.msra.mxu0 %v2159_v37  ;;  %3163 = vmatprep.subr.mxu1 %v3895_v0  ;;  %v2136_v37 = vld [vmem:[#allocation10 + $0x1] ss:$0 sm:$0xff] }
  0x5a   :  { %3130 = vmatprep.subr.mxu0 %v3895_v0  ;;  %3164 = vmatpush3.msra.mxu1 %v2191_v44 }
  0x5b   :  { %3131 = vmatpush3.msra.mxu0 %v2158_v41  ;;  %3165 = vmatprep.subr.mxu1 %v3895_v0 }
  0x5c   :  { %3132 = vmatprep.subr.mxu0 %v3895_v0  ;;  %3166 = vmatpush3.msra.mxu1 %v2190_v47  ;;  %v2729_v47 = vld [vmem:[#allocation9 + $0x130] sm:$0xff]  }
  0x5d   :  { %3133 = vmatpush3.msra.mxu0 %v2155_v43  ;;  %3167 = vmatprep.subr.mxu1 %v3895_v0  ;;  %v2249_v43 = vld [vmem:[#allocation9 + $0xc0] sm:$0xff]   ;;  %v2306_v52 = vunpack.c.l.bf16 %v2729_v47 }
  0x5e   :  { %3134 = vmatprep.subr.mxu0 %v3895_v0  ;;  %3168 = vmatpush3.msra.mxu1 %v2187_v49  ;;  %v2251_v44 = vunpack.c.h.bf16 %v2249_v43 }
  0x5f   :  { %3135 = vmatpush3.msra.mxu0 %v2154_v45  ;;  %3169 = vmatprep.subr.mxu1 %v3895_v0  ;;  %v2250_v45 = vunpack.c.l.bf16 %v2249_v43 }
  0x60   :  { %3137 = vmatmul.mubr.f32.vlgmr.msra.gmra.mxu0 %v100_v46  ;;  %3174 = vmatprep.subr.mxu0 %v3895_v0  ;;  %v2730_v46 = vld [vmem:[#allocation9 + $0x138] sm:$0xff]  }
  0x61   :  { %3206 = vmatprep.mubr.msk.f32.mxu0 %vm3896_vm0, %v3895_v0  ;;  %3170 = vmatpush3.msra.mxu1 %v2186_v50  ;;  %v2311_v48 = vunpack.c.h.bf16 %v2730_v46  ;;  %v2310_v49 = vunpack.c.l.bf16 %v2730_v46  ;;  %v2307_v50 = vunpack.c.h.bf16 %v2729_v47  ;;  %v2742_v46 = vld [vmem:[#allocation9 + $0x1a8] sm:$0xff]  }
  0x62   :  { %3209 = vmatprep.subr.mxu1 %v3895_v0  ;;  %3175 = vmatpush3.msra.mxu0 %v2247_v53  ;;  %v2303_v53 = vunpack.c.h.bf16 %v2728_v51 }
  0x63   :  { %3176 = vmatprep.subr.mxu0 %v3895_v0 }
  0x64   :  { %3177 = vmatpush3.msra.mxu0 %v2246_v54  ;;  %v2727_v54 = vld [vmem:[#allocation9 + $0x120] sm:$0xff]  }
  0x65   :  { %3178 = vmatprep.subr.mxu0 %v3895_v0  ;;  %v2299_v56 = vunpack.c.h.bf16 %v2727_v54 }
  0x66   :  { %3179 = vmatpush3.msra.mxu0 %v2243_v55  ;;  %v2302_v55 = vunpack.c.l.bf16 %v2728_v51 }
  0x67   :  { %3180 = vmatprep.subr.mxu0 %v3895_v0 }
  0x68   :  { %3181 = vmatpush3.msra.mxu0 %v2242_v57  ;;  %v2726_v57 = vld [vmem:[#allocation9 + $0x118] sm:$0xff]  }
  0x69   :  { %3182 = vmatprep.subr.mxu0 %v3895_v0  ;;  %v2295_v59 = vunpack.c.h.bf16 %v2726_v57 }
  0x6a   :  { %3183 = vmatpush3.msra.mxu0 %v2239_v58  ;;  %v2298_v58 = vunpack.c.l.bf16 %v2727_v54 }
  0x6b   :  { %3184 = vmatprep.subr.mxu0 %v3895_v0 }
  0x6c   :  { %3185 = vmatpush3.msra.mxu0 %v2238_v60  ;;  %v2725_v60 = vld [vmem:[#allocation9 + $0x110] sm:$0xff]  }
  0x6d   :  { %3186 = vmatprep.subr.mxu0 %v3895_v0  ;;  %v2291_v62 = vunpack.c.h.bf16 %v2725_v60 }
  0x6e   :  { %3187 = vmatpush3.msra.mxu0 %v2235_v61  ;;  %v2294_v61 = vunpack.c.l.bf16 %v2726_v57 }
  0x6f   :  { %3188 = vmatprep.subr.mxu0 %v3895_v0 }
  0x70   :  { %3189 = vmatpush3.msra.mxu0 %v2234_v63  ;;  %v2724_v63 = vld [vmem:[#allocation9 + $0x108] sm:$0xff]  }
  0x71   :  { %3190 = vmatprep.subr.mxu0 %v3895_v0  ;;  %v2287_v2 = vunpack.c.h.bf16 %v2724_v63 }
  0x72   :  { %3191 = vmatpush3.msra.mxu0 %v2231_v1  ;;  %v2290_v1 = vunpack.c.l.bf16 %v2725_v60 }
  0x73   :  { %3192 = vmatprep.subr.mxu0 %v3895_v0 }
  0x74   :  { %3193 = vmatpush3.msra.mxu0 %v2230_v3  ;;  %v2137_v3 = vld [vmem:[#allocation10 + $0x2] ss:$0 sm:$0xff] }
  0x75   :  { %3194 = vmatprep.subr.mxu0 %v3895_v0 }
  0x76   :  { %3195 = vmatpush3.msra.mxu0 %v2227_v4 }
  0x77   :  { %3196 = vmatprep.subr.mxu0 %v3895_v0 }
  0x78   :  { %3197 = vmatpush3.msra.mxu0 %v2226_v6 }
  0x79   :  { %3198 = vmatprep.subr.mxu0 %v3895_v0 }
  0x7a   :  { %3199 = vmatpush3.msra.mxu0 %v2223_v7 }
  0x7b   :  { %3200 = vmatprep.subr.mxu0 %v3895_v0 }
  0x7c   :  { %3201 = vmatpush3.msra.mxu0 %v2222_v13  ;;  %v2736_v13 = vld [vmem:[#allocation9 + $0x170] sm:$0xff]  }
  0x7d   :  { %3202 = vmatprep.subr.mxu0 %v3895_v0  ;;  %v2338_v18 = vunpack.c.l.bf16 %v2736_v13 }
  0x7e   :  { %3203 = vmatpush3.msra.mxu0 %v2219_v15 }
  0x7f   :  { %3204 = vmatprep.subr.mxu0 %v3895_v0 }
  0x80   :  { %3205 = vmatpush3.msra.mxu0 %v2218_v16  ;;  %v2339_v16 = vunpack.c.h.bf16 %v2736_v13 }
  0x81   :  { %3244 = vmatprep.subr.mxu0 %v3895_v0 }
 0x120   :  { %v204_v9 = vpop.f32.mrf.mxu0 }
 0x121   :  { %v205_v10 = vadd.f32 %v2135_v8, %v204_v9  ;;  %v2286_v8 = vunpack.c.l.bf16 %v2724_v63  ;;  %v2281_v9 = vld [vmem:[#allocation9 + $0x100] sm:$0xff]  }
 0x122   :  { %v3138_v11 = vpop.f32.mrf.mxu0 }
 0x123   :  { %v208_v12 = vmax.f32 %v205_v10, 0.0  ;;  %v2283_v10 = vunpack.c.h.bf16 %v2281_v9  ;;  %v2282_v11 = vunpack.c.l.bf16 %v2281_v9 }
 0x125   :  { %3172 = vmatmul.mubr.f32.vlgmr.msra.gmra.mxu1 %v208_v12  ;;  %v2737_v12 = vld [vmem:[#allocation9 + $0x178] sm:$0xff]  }
 0x126   :  { %3241 = vmatprep.mubr.msk.f32.mxu1 %vm3896_vm0, %v3895_v0  ;;  %3210 = vmatpush3.msra.mxu1 %v2279_v19  ;;  %v2343_v14 = vunpack.c.h.bf16 %v2737_v12  ;;  %v2342_v15 = vunpack.c.l.bf16 %v2737_v12  ;;  %v2335_v19 = vunpack.c.h.bf16 %v2735_v17  ;;  %v2749_v12 = vld [vmem:[#allocation9 + $0x1e8] sm:$0xff]  }
 0x127   :  { %3211 = vmatprep.subr.mxu1 %v3895_v0 }
 0x128   :  { %3212 = vmatpush3.msra.mxu1 %v2278_v20  ;;  %v2734_v20 = vld [vmem:[#allocation9 + $0x160] sm:$0xff]  }
 0x129   :  { %3213 = vmatprep.subr.mxu1 %v3895_v0  ;;  %v2331_v22 = vunpack.c.h.bf16 %v2734_v20 }
 0x12a   :  { %3214 = vmatpush3.msra.mxu1 %v2275_v21  ;;  %v2334_v21 = vunpack.c.l.bf16 %v2735_v17 }
 0x12b   :  { %3215 = vmatprep.subr.mxu1 %v3895_v0 }
 0x12c   :  { %3216 = vmatpush3.msra.mxu1 %v2274_v23  ;;  %v2733_v23 = vld [vmem:[#allocation9 + $0x158] sm:$0xff]  }
 0x12d   :  { %3217 = vmatprep.subr.mxu1 %v3895_v0  ;;  %v2327_v25 = vunpack.c.h.bf16 %v2733_v23 }
 0x12e   :  { %3218 = vmatpush3.msra.mxu1 %v2271_v24  ;;  %v2330_v24 = vunpack.c.l.bf16 %v2734_v20 }
 0x12f   :  { %3219 = vmatprep.subr.mxu1 %v3895_v0 }
 0x130   :  { %3220 = vmatpush3.msra.mxu1 %v2270_v26  ;;  %v2732_v26 = vld [vmem:[#allocation9 + $0x150] sm:$0xff]  }
 0x131   :  { %3221 = vmatprep.subr.mxu1 %v3895_v0  ;;  %v2323_v28 = vunpack.c.h.bf16 %v2732_v26 }
 0x132   :  { %3222 = vmatpush3.msra.mxu1 %v2267_v27  ;;  %v2326_v27 = vunpack.c.l.bf16 %v2733_v23 }
 0x133   :  { %3223 = vmatprep.subr.mxu1 %v3895_v0 }
 0x134   :  { %3224 = vmatpush3.msra.mxu1 %v2266_v29  ;;  %v2731_v29 = vld [vmem:[#allocation9 + $0x148] sm:$0xff]  }
 0x135   :  { %3225 = vmatprep.subr.mxu1 %v3895_v0  ;;  %v2319_v31 = vunpack.c.h.bf16 %v2731_v29 }
 0x136   :  { %3226 = vmatpush3.msra.mxu1 %v2263_v30  ;;  %v2322_v30 = vunpack.c.l.bf16 %v2732_v26 }
 0x137   :  { %3227 = vmatprep.subr.mxu1 %v3895_v0 }
 0x138   :  { %3228 = vmatpush3.msra.mxu1 %v2262_v32  ;;  %v2138_v32 = vld [vmem:[#allocation10 + $0x3] ss:$0 sm:$0xff] }
 0x139   :  { %3229 = vmatprep.subr.mxu1 %v3895_v0 }
 0x13a   :  { %3230 = vmatpush3.msra.mxu1 %v2259_v33 }
 0x13b   :  { %3231 = vmatprep.subr.mxu1 %v3895_v0 }
 0x13c   :  { %3232 = vmatpush3.msra.mxu1 %v2258_v35 }
 0x13d   :  { %3233 = vmatprep.subr.mxu1 %v3895_v0 }
 0x13e   :  { %3234 = vmatpush3.msra.mxu1 %v2255_v36 }
 0x13f   :  { %3235 = vmatprep.subr.mxu1 %v3895_v0 }
 0x140   :  { %3236 = vmatpush3.msra.mxu1 %v2254_v42  ;;  %v2743_v42 = vld [vmem:[#allocation9 + $0x1b0] sm:$0xff]  }
 0x141   :  { %3237 = vmatprep.subr.mxu1 %v3895_v0  ;;  %v2370_v47 = vunpack.c.l.bf16 %v2743_v42 }
 0x142   :  { %3238 = vmatpush3.msra.mxu1 %v2251_v44 }
 0x143   :  { %3239 = vmatprep.subr.mxu1 %v3895_v0 }
 0x144   :  { %3240 = vmatpush3.msra.mxu1 %v2250_v45  ;;  %v2371_v45 = vunpack.c.h.bf16 %v2743_v42 }
 0x145   :  { %3279 = vmatprep.subr.mxu1 %v3895_v0 }
 0x1e5   :  { %v313_v38 = vpop.f32.mrf.mxu1 }
 0x1e6   :  { %v314_v39 = vadd.f32 %v2136_v37, %v313_v38  ;;  %v2318_v37 = vunpack.c.l.bf16 %v2731_v29  ;;  %v2313_v38 = vld [vmem:[#allocation9 + $0x140] sm:$0xff]  }
 0x1e7   :  { %v3173_v40 = vpop.f32.mrf.mxu1 }
 0x1e8   :  { %v317_v41 = vmax.f32 %v314_v39, 0.0  ;;  %v2315_v39 = vunpack.c.h.bf16 %v2313_v38  ;;  %v2314_v40 = vunpack.c.l.bf16 %v2313_v38  ;;  %v984_v38 = vld [vmem:[#allocation12 + $0x68] sm:$0xff] }
 0x1ea   :  { %3207 = vmatmul.mubr.f32.vlgmr.msra.gmra.mxu0 %v317_v41  ;;  %v2744_v41 = vld [vmem:[#allocation9 + $0x1b8] sm:$0xff]  }
 0x1eb   :  { %3276 = vmatprep.mubr.msk.f32.mxu0 %vm3896_vm0, %v3895_v0  ;;  %3245 = vmatpush3.msra.mxu0 %v2311_v48  ;;  %v2375_v43 = vunpack.c.h.bf16 %v2744_v41  ;;  %v2374_v44 = vunpack.c.l.bf16 %v2744_v41  ;;  %v2367_v48 = vunpack.c.h.bf16 %v2742_v46 }
 0x1ec   :  { %3246 = vmatprep.subr.mxu0 %v3895_v0 }
 0x1ed   :  { %3247 = vmatpush3.msra.mxu0 %v2310_v49  ;;  %v2741_v49 = vld [vmem:[#allocation9 + $0x1a0] sm:$0xff]  }
 0x1ee   :  { %3248 = vmatprep.subr.mxu0 %v3895_v0  ;;  %v2363_v51 = vunpack.c.h.bf16 %v2741_v49 }
 0x1ef   :  { %3249 = vmatpush3.msra.mxu0 %v2307_v50  ;;  %v2366_v50 = vunpack.c.l.bf16 %v2742_v46  ;;  %v982_v46 = vld [vmem:[#allocation12 + $0x58] sm:$0xff] }
 0x1f0   :  { %3250 = vmatprep.subr.mxu0 %v3895_v0 }
 0x1f1   :  { %3251 = vmatpush3.msra.mxu0 %v2306_v52  ;;  %v2740_v52 = vld [vmem:[#allocation9 + $0x198] sm:$0xff]  }
 0x1f2   :  { %3252 = vmatprep.subr.mxu0 %v3895_v0  ;;  %v2359_v54 = vunpack.c.h.bf16 %v2740_v52 }
 0x1f3   :  { %3253 = vmatpush3.msra.mxu0 %v2303_v53  ;;  %v2362_v53 = vunpack.c.l.bf16 %v2741_v49  ;;  %v981_v49 = vld [vmem:[#allocation12 + $0x50] sm:$0xff] }
 0x1f4   :  { %3254 = vmatprep.subr.mxu0 %v3895_v0 }
 0x1f5   :  { %3255 = vmatpush3.msra.mxu0 %v2302_v55  ;;  %v2739_v55 = vld [vmem:[#allocation9 + $0x190] sm:$0xff]  }
 0x1f6   :  { %3256 = vmatprep.subr.mxu0 %v3895_v0  ;;  %v2355_v57 = vunpack.c.h.bf16 %v2739_v55 }
 0x1f7   :  { %3257 = vmatpush3.msra.mxu0 %v2299_v56  ;;  %v2358_v56 = vunpack.c.l.bf16 %v2740_v52  ;;  %v1008_v52 = vunpack.c.h.bf16 %v981_v49 }
 0x1f8   :  { %3258 = vmatprep.subr.mxu0 %v3895_v0 }
 0x1f9   :  { %3259 = vmatpush3.msra.mxu0 %v2298_v58  ;;  %v2738_v58 = vld [vmem:[#allocation9 + $0x188] sm:$0xff]  }
 0x1fa   :  { %3260 = vmatprep.subr.mxu0 %v3895_v0  ;;  %v2351_v60 = vunpack.c.h.bf16 %v2738_v58 }
 0x1fb   :  { %3261 = vmatpush3.msra.mxu0 %v2295_v59  ;;  %v2354_v59 = vunpack.c.l.bf16 %v2739_v55 }
 0x1fc   :  { %3262 = vmatprep.subr.mxu0 %v3895_v0 }
 0x1fd   :  { %3263 = vmatpush3.msra.mxu0 %v2294_v61  ;;  %v2139_v61 = vld [vmem:[#allocation10 + $0x4] ss:$0 sm:$0xff] }
 0x1fe   :  { %3264 = vmatprep.subr.mxu0 %v3895_v0 }
 0x1ff   :  { %3265 = vmatpush3.msra.mxu0 %v2291_v62 }
 0x200   :  { %3266 = vmatprep.subr.mxu0 %v3895_v0 }
 0x201   :  { %3267 = vmatpush3.msra.mxu0 %v2290_v1 }
 0x202   :  { %3268 = vmatprep.subr.mxu0 %v3895_v0 }
 0x203   :  { %3269 = vmatpush3.msra.mxu0 %v2287_v2 }
 0x204   :  { %3270 = vmatprep.subr.mxu0 %v3895_v0 }
 0x205   :  { %3271 = vmatpush3.msra.mxu0 %v2286_v8  ;;  %v2750_v8 = vld [vmem:[#allocation9 + $0x1f0] sm:$0xff]  }
 0x206   :  { %3272 = vmatprep.subr.mxu0 %v3895_v0  ;;  %v2402_v13 = vunpack.c.l.bf16 %v2750_v8 }
 0x207   :  { %3273 = vmatpush3.msra.mxu0 %v2283_v10 }
 0x208   :  { %3274 = vmatprep.subr.mxu0 %v3895_v0 }
 0x209   :  { %3275 = vmatpush3.msra.mxu0 %v2282_v11  ;;  %v2403_v11 = vunpack.c.h.bf16 %v2750_v8 }
 0x20a   :  { %3314 = vmatprep.subr.mxu0 %v3895_v0 }
 0x2aa   :  { %v422_v4 = vpop.f32.mrf.mxu0 }
 0x2ab   :  { %v423_v5 = vadd.f32 %v2137_v3, %v422_v4  ;;  %v2350_v3 = vunpack.c.l.bf16 %v2738_v58  ;;  %v2345_v4 = vld [vmem:[#allocation9 + $0x180] sm:$0xff]  }
 0x2ac   :  { %v3208_v6 = vpop.f32.mrf.mxu0 }
 0x2ad   :  { %v426_v7 = vmax.f32 %v423_v5, 0.0  ;;  %v2347_v5 = vunpack.c.h.bf16 %v2345_v4  ;;  %v2346_v6 = vunpack.c.l.bf16 %v2345_v4 }
 0x2af   :  { %3242 = vmatmul.mubr.f32.vlgmr.msra.gmra.mxu1 %v426_v7  ;;  %v2751_v7 = vld [vmem:[#allocation9 + $0x1f8] sm:$0xff]  }
 0x2b0   :  { %3311 = vmatprep.mubr.msk.f32.mxu1 %vm3896_vm0, %v3895_v0  ;;  %3280 = vmatpush3.msra.mxu1 %v2343_v14  ;;  %v2407_v9 = vunpack.c.h.bf16 %v2751_v7  ;;  %v2406_v10 = vunpack.c.l.bf16 %v2751_v7  ;;  %v2399_v14 = vunpack.c.h.bf16 %v2749_v12 }
 0x2b1   :  { %3281 = vmatprep.subr.mxu1 %v3895_v0 }
 0x2b2   :  { %3282 = vmatpush3.msra.mxu1 %v2342_v15  ;;  %v2748_v15 = vld [vmem:[#allocation9 + $0x1e0] sm:$0xff]  }
 0x2b3   :  { %3283 = vmatprep.subr.mxu1 %v3895_v0  ;;  %v2395_v17 = vunpack.c.h.bf16 %v2748_v15 }
 0x2b4   :  { %3284 = vmatpush3.msra.mxu1 %v2339_v16  ;;  %v2398_v16 = vunpack.c.l.bf16 %v2749_v12  ;;  %v972_v12 = vld [vmem:[#allocation12 + $0x8] sm:$0xff] }
 0x2b5   :  { %3285 = vmatprep.subr.mxu1 %v3895_v0 }
 0x2b6   :  { %3286 = vmatpush3.msra.mxu1 %v2338_v18  ;;  %v2747_v18 = vld [vmem:[#allocation9 + $0x1d8] sm:$0xff]  }
 0x2b7   :  { %3287 = vmatprep.subr.mxu1 %v3895_v0  ;;  %v2391_v20 = vunpack.c.h.bf16 %v2747_v18 }
 0x2b8   :  { %3288 = vmatpush3.msra.mxu1 %v2335_v19  ;;  %v2394_v19 = vunpack.c.l.bf16 %v2748_v15  ;;  %v990_v15 = vunpack.c.h.bf16 %v972_v12 }
 0x2b9   :  { %3289 = vmatprep.subr.mxu1 %v3895_v0 }
 0x2ba   :  { %3290 = vmatpush3.msra.mxu1 %v2334_v21  ;;  %v2746_v21 = vld [vmem:[#allocation9 + $0x1d0] sm:$0xff]  }
 0x2bb   :  { %3291 = vmatprep.subr.mxu1 %v3895_v0  ;;  %v2387_v23 = vunpack.c.h.bf16 %v2746_v21 }
 0x2bc   :  { %3292 = vmatpush3.msra.mxu1 %v2331_v22  ;;  %v2390_v22 = vunpack.c.l.bf16 %v2747_v18 }
 0x2bd   :  { %3293 = vmatprep.subr.mxu1 %v3895_v0 }
 0x2be   :  { %3294 = vmatpush3.msra.mxu1 %v2330_v24  ;;  %v2745_v24 = vld [vmem:[#allocation9 + $0x1c8] sm:$0xff]  }
 0x2bf   :  { %3295 = vmatprep.subr.mxu1 %v3895_v0  ;;  %v2383_v26 = vunpack.c.h.bf16 %v2745_v24 }
 0x2c0   :  { %3296 = vmatpush3.msra.mxu1 %v2327_v25  ;;  %v2386_v25 = vunpack.c.l.bf16 %v2746_v21 }
 0x2c1   :  { %3297 = vmatprep.subr.mxu1 %v3895_v0 }
 0x2c2   :  { %3298 = vmatpush3.msra.mxu1 %v2326_v27  ;;  %v2140_v27 = vld [vmem:[#allocation10 + $0x5] ss:$0 sm:$0xff] }
 0x2c3   :  { %3299 = vmatprep.subr.mxu1 %v3895_v0 }
 0x2c4   :  { %3300 = vmatpush3.msra.mxu1 %v2323_v28 }
 0x2c5   :  { %3301 = vmatprep.subr.mxu1 %v3895_v0 }
 0x2c6   :  { %3302 = vmatpush3.msra.mxu1 %v2322_v30 }
 0x2c7   :  { %3303 = vmatprep.subr.mxu1 %v3895_v0 }
 0x2c8   :  { %3304 = vmatpush3.msra.mxu1 %v2319_v31 }
 0x2c9   :  { %3305 = vmatprep.subr.mxu1 %v3895_v0 }
 0x2ca   :  { %3306 = vmatpush3.msra.mxu1 %v2318_v37  ;;  %v985_v37 = vld [vmem:[#allocation12 + $0x70] sm:$0xff] }
 0x2cb   :  { %3307 = vmatprep.subr.mxu1 %v3895_v0  ;;  %v1016_v41 = vunpack.c.h.bf16 %v985_v37  ;;  %v1015_v42 = vunpack.c.l.bf16 %v985_v37 }
 0x2cc   :  { %3308 = vmatpush3.msra.mxu1 %v2315_v39 }
 0x2cd   :  { %3309 = vmatprep.subr.mxu1 %v3895_v0 }
 0x2ce   :  { %3310 = vmatpush3.msra.mxu1 %v2314_v40 }
 0x2cf   :  { %3349 = vmatprep.subr.mxu1 %v3895_v0 }
 0x36f   :  { %v531_v33 = vpop.f32.mrf.mxu1 }
 0x370   :  { %v532_v34 = vadd.f32 %v2138_v32, %v531_v33  ;;  %v2382_v32 = vunpack.c.l.bf16 %v2745_v24  ;;  %v2377_v33 = vld [vmem:[#allocation9 + $0x1c0] sm:$0xff]  }
 0x371   :  { %v3243_v35 = vpop.f32.mrf.mxu1 }
 0x372   :  { %v535_v36 = vmax.f32 %v532_v34, 0.0  ;;  %v2379_v34 = vunpack.c.h.bf16 %v2377_v33  ;;  %v2378_v35 = vunpack.c.l.bf16 %v2377_v33  ;;  %v2757_v33 = vld [vmem:[#allocation9 + $0x230] sm:$0xff]  }
 0x374   :  { %3277 = vmatmul.mubr.f32.vlgmr.msra.gmra.mxu0 %v535_v36  ;;  %v986_v36 = vld [vmem:[#allocation12 + $0x78] sm:$0xff] }
 0x375   :  { %3346 = vmatprep.mubr.msk.f32.mxu0 %vm3896_vm0, %v3895_v0  ;;  %3315 = vmatpush3.msra.mxu0 %v2375_v43  ;;  %v1017_v39 = vunpack.c.l.bf16 %v986_v36  ;;  %v1018_v40 = vunpack.c.h.bf16 %v986_v36  ;;  %v983_v43 = vld [vmem:[#allocation12 + $0x60] sm:$0xff]  ;;  %v2756_v36 = vld [vmem:[#allocation9 + $0x228] sm:$0xff]  }
 0x376   :  { %3316 = vmatprep.subr.mxu0 %v3895_v0  ;;  %v2431_v37 = vunpack.c.h.bf16 %v2756_v36 }
 0x377   :  { %3317 = vmatpush3.msra.mxu0 %v2374_v44  ;;  %v1014_v44 = vunpack.c.h.bf16 %v984_v38 }
 0x378   :  { %3318 = vmatprep.subr.mxu0 %v3895_v0 }
 0x379   :  { %3319 = vmatpush3.msra.mxu0 %v2371_v45  ;;  %v1013_v45 = vunpack.c.l.bf16 %v984_v38  ;;  %v2430_v38 = vunpack.c.l.bf16 %v2756_v36 }
 0x37a   :  { %3320 = vmatprep.subr.mxu0 %v3895_v0 }
 0x37b   :  { %3321 = vmatpush3.msra.mxu0 %v2370_v47  ;;  %v1012_v47 = vunpack.c.h.bf16 %v983_v43 }
 0x37c   :  { %3322 = vmatprep.subr.mxu0 %v3895_v0 }
 0x37d   :  { %3323 = vmatpush3.msra.mxu0 %v2367_v48  ;;  %v1011_v48 = vunpack.c.l.bf16 %v983_v43  ;;  %v2753_v43 = vld [vmem:[#allocation9 + $0x210] sm:$0xff]  }
 0x37e   :  { %3324 = vmatprep.subr.mxu0 %v3895_v0 }
 0x37f   :  { %3325 = vmatpush3.msra.mxu0 %v2366_v50  ;;  %v1010_v50 = vunpack.c.h.bf16 %v982_v46 }
 0x380   :  { %3326 = vmatprep.subr.mxu0 %v3895_v0 }
 0x381   :  { %3327 = vmatpush3.msra.mxu0 %v2363_v51  ;;  %v1009_v51 = vunpack.c.l.bf16 %v982_v46  ;;  %v97_v46 = vld [vmem:[#allocation7] sm:$0xff] }
 0x382   :  { %3328 = vmatprep.subr.mxu0 %v3895_v0 }
 0x383   :  { %3329 = vmatpush3.msra.mxu0 %v2362_v53  ;;  %v1007_v53 = vunpack.c.l.bf16 %v981_v49  ;;  %v2418_v49 = vunpack.c.l.bf16 %v2753_v43 }
 0x384   :  { %3330 = vmatprep.subr.mxu0 %v3895_v0 }
 0x385   :  { %3331 = vmatpush3.msra.mxu0 %v2359_v54  ;;  %v979_v54 = vld [vmem:[#allocation12 + $0x40] sm:$0xff] }
 0x386   :  { %3332 = vmatprep.subr.mxu0 %v3895_v0  ;;  %v1004_v58 = vunpack.c.h.bf16 %v979_v54 }
 0x387   :  { %3333 = vmatpush3.msra.mxu0 %v2358_v56 }
 0x388   :  { %3334 = vmatprep.subr.mxu0 %v3895_v0 }
 0x389   :  { %3335 = vmatpush3.msra.mxu0 %v2355_v57  ;;  %v978_v57 = vld [vmem:[#allocation12 + $0x38] sm:$0xff] }
 0x38a   :  { %3336 = vmatprep.subr.mxu0 %v3895_v0 }
 0x38b   :  { %3337 = vmatpush3.msra.mxu0 %v2354_v59  ;;  %v1003_v59 = vunpack.c.l.bf16 %v979_v54  ;;  %v2765_v54 = vld [vmem:[#allocation9 + $0x278] sm:$0xff]  }
 0x38c   :  { %3338 = vmatprep.subr.mxu0 %v3895_v0 }
 0x38d   :  { %3339 = vmatpush3.msra.mxu0 %v2351_v60  ;;  %v977_v60 = vld [vmem:[#allocation12 + $0x30] sm:$0xff] }
 0x38e   :  { %3340 = vmatprep.subr.mxu0 %v3895_v0 }
 0x38f   :  { %3341 = vmatpush3.msra.mxu0 %v2350_v3  ;;  %v975_v3 = vld [vmem:[#allocation12 + $0x20] sm:$0xff] }
 0x390   :  { %3342 = vmatprep.subr.mxu0 %v3895_v0  ;;  %v996_v7 = vunpack.c.h.bf16 %v975_v3  ;;  %v995_v8 = vunpack.c.l.bf16 %v975_v3 }
 0x391   :  { %3343 = vmatpush3.msra.mxu0 %v2347_v5 }
 0x392   :  { %3344 = vmatprep.subr.mxu0 %v3895_v0 }
 0x393   :  { %3345 = vmatpush3.msra.mxu0 %v2346_v6  ;;  %v974_v6 = vld [vmem:[#allocation12 + $0x18] sm:$0xff] }
 0x394   :  { %1031 = vmatprep.subr.mxu0 %v1018_v40 }
 0x434   :  { %v640_v62 = vpop.f32.mrf.mxu0 }
 0x435   :  { %v641_v63 = vadd.f32 %v2139_v61, %v640_v62  ;;  %v1002_v61 = vunpack.c.h.bf16 %v978_v57  ;;  %v1001_v62 = vunpack.c.l.bf16 %v978_v57  ;;  %v2470_v57 = vunpack.c.l.bf16 %v2765_v54 }
 0x436   :  { %v3278_v1 = vpop.f32.mrf.mxu0 }
 0x437   :  { %v644_v2 = vmax.f32 %v641_v63, 0.0  ;;  %v976_v63 = vld [vmem:[#allocation12 + $0x28] sm:$0xff]  ;;  %v1000_v1 = vunpack.c.h.bf16 %v977_v60 }
 0x438   :  { %v998_v4 = vunpack.c.h.bf16 %v976_v63  ;;  %v997_v5 = vunpack.c.l.bf16 %v976_v63 }
 0x439   :  { %3312 = vmatmul.mubr.f32.vlgmr.msra.gmra.mxu1 %v644_v2  ;;  %v999_v2 = vunpack.c.l.bf16 %v977_v60 }
 0x43a   :  { %3381 = vmatprep.mubr.msk.f32.mxu1 %vm3896_vm0, %v3895_v0  ;;  %3350 = vmatpush3.msra.mxu1 %v2407_v9  ;;  %v973_v9 = vld [vmem:[#allocation12 + $0x10] sm:$0xff] }
 0x43b   :  { %3351 = vmatprep.subr.mxu1 %v3895_v0 }
 0x43c   :  { %3352 = vmatpush3.msra.mxu1 %v2406_v10  ;;  %v994_v10 = vunpack.c.h.bf16 %v974_v6 }
 0x43d   :  { %3353 = vmatprep.subr.mxu1 %v3895_v0 }
 0x43e   :  { %3354 = vmatpush3.msra.mxu1 %v2403_v11  ;;  %v993_v11 = vunpack.c.l.bf16 %v974_v6 }
 0x43f   :  { %3355 = vmatprep.subr.mxu1 %v3895_v0 }
 0x440   :  { %3356 = vmatpush3.msra.mxu1 %v2402_v13  ;;  %v992_v13 = vunpack.c.h.bf16 %v973_v9 }
 0x441   :  { %3357 = vmatprep.subr.mxu1 %v3895_v0 }
 0x442   :  { %3358 = vmatpush3.msra.mxu1 %v2399_v14  ;;  %v991_v14 = vunpack.c.l.bf16 %v973_v9 }
 0x443   :  { %3359 = vmatprep.subr.mxu1 %v3895_v0 }
 0x444   :  { %3360 = vmatpush3.msra.mxu1 %v2398_v16  ;;  %v989_v16 = vunpack.c.l.bf16 %v972_v12 }
 0x445   :  { %3361 = vmatprep.subr.mxu1 %v3895_v0 }
 0x446   :  { %3362 = vmatpush3.msra.mxu1 %v2395_v17  ;;  %v2141_v17 = vld [vmem:[#allocation10 + $0x6] ss:$0 sm:$0xff] }
 0x447   :  { %3363 = vmatprep.subr.mxu1 %v3895_v0 }
 0x448   :  { %3364 = vmatpush3.msra.mxu1 %v2394_v19 }
 0x449   :  { %3365 = vmatprep.subr.mxu1 %v3895_v0 }
 0x44a   :  { %3366 = vmatpush3.msra.mxu1 %v2391_v20 }
 0x44b   :  { %3367 = vmatprep.subr.mxu1 %v3895_v0 }
 0x44c   :  { %3368 = vmatpush3.msra.mxu1 %v2390_v22  ;;  %v4114_v22 = vld [vmem:[#allocation3] sm:$0xff] }
 0x44d   :  { %3369 = vmatprep.subr.mxu1 %v3895_v0  ;;  %99 = vst.msk [vmem:[#allocation3] sm:$0xff] %vm98_vm2, %v97_v46 }
 0x44e   :  { %3370 = vmatpush3.msra.mxu1 %v2387_v23  ;;  %v971_v23 = vld [vmem:[#allocation12] sm:$0xff] }
 0x44f   :  { %3371 = vmatprep.subr.mxu1 %v3895_v0  ;;  %v988_v24 = vunpack.c.h.bf16 %v971_v23 }
 0x450   :  { %3372 = vmatpush3.msra.mxu1 %v2386_v25  ;;  %v987_v25 = vunpack.c.l.bf16 %v971_v23 }
 0x451   :  { %3373 = vmatprep.subr.mxu1 %v3895_v0 }
 0x452   :  { %3374 = vmatpush3.msra.mxu1 %v2383_v26  ;;  %v2758_v26 = vld [vmem:[#allocation9 + $0x238] sm:$0xff]  }
 0x453   :  { %3375 = vmatprep.subr.mxu1 %v3895_v0 }
 0x454   :  { %3376 = vmatpush3.msra.mxu1 %v2382_v32 }
 0x455   :  { %3377 = vmatprep.subr.mxu1 %v3895_v0 }
 0x456   :  { %3378 = vmatpush3.msra.mxu1 %v2379_v34  ;;  %v2435_v34 = vunpack.c.h.bf16 %v2757_v33 }
 0x457   :  { %3379 = vmatprep.subr.mxu1 %v3895_v0 }
 0x458   :  { %3380 = vmatpush3.msra.mxu1 %v2378_v35  ;;  %v2434_v35 = vunpack.c.l.bf16 %v2757_v33  ;;  %v2772_v33 = vld [vmem:[#allocation9 + $0x2b8] sm:$0xff]  }
 0x459   :  { %3384 = vmatprep.subr.mxu1 %v3895_v0  ;;  %v2502_v36 = vunpack.c.l.bf16 %v2772_v33 }
 0x4f9   :  { %v749_v28 = vpop.f32.mrf.mxu1 }
 0x4fa   :  { %v750_v29 = vadd.f32 %v2140_v27, %v749_v28  ;;  %v2439_v27 = vunpack.c.h.bf16 %v2758_v26  ;;  %v2438_v28 = vunpack.c.l.bf16 %v2758_v26 }
 0x4fb   :  { %v3313_v30 = vpop.f32.mrf.mxu1 }
 0x4fc   :  { %v753_v31 = vmax.f32 %v750_v29, 0.0  ;;  %v2142_v29 = vld [vmem:[#allocation10 + $0x7] ss:$0 sm:$0xff] }
 0x4fe   :  { %3347 = vmatmul.mubr.f32.vlgmr.msra.gmra.mxu0 %v753_v31 }
 0x4ff   :  { %1095 = vmatprep.mubr.f32.mxu0 %v3895_v0  ;;  %1032 = vmatpush1.msra.mxu0 %v1017_v39  ;;  %v980_v0 = vld [vmem:[#allocation12 + $0x48] sm:$0xff] }
 0x500   :  { %1033 = vmatprep.subr.mxu0 %v1016_v41  ;;  %v1006_v55 = vunpack.c.h.bf16 %v980_v0  ;;  %v1005_v56 = vunpack.c.l.bf16 %v980_v0  ;;  %v2755_v39 = vld [vmem:[#allocation9 + $0x220] sm:$0xff]  }
 0x501   :  { %1034 = vmatpush1.msra.mxu0 %v1015_v42  ;;  %v2427_v40 = vunpack.c.h.bf16 %v2755_v39  ;;  %v2426_v41 = vunpack.c.l.bf16 %v2755_v39  ;;  %v2754_v42 = vld [vmem:[#allocation9 + $0x218] sm:$0xff]  }
 0x502   :  { %1035 = vmatprep.subr.mxu0 %v1014_v44  ;;  %v2423_v44 = vunpack.c.h.bf16 %v2754_v42 }
 0x503   :  { %1036 = vmatpush1.msra.mxu0 %v1013_v45  ;;  %v2422_v45 = vunpack.c.l.bf16 %v2754_v42 }
 0x504   :  { %1037 = vmatprep.subr.mxu0 %v1012_v47  ;;  %v2419_v47 = vunpack.c.h.bf16 %v2753_v43 }
 0x505   :  { %1038 = vmatpush1.msra.mxu0 %v1011_v48  ;;  %v2752_v48 = vld [vmem:[#allocation9 + $0x208] sm:$0xff]  }
 0x506   :  { %1039 = vmatprep.subr.mxu0 %v1010_v50  ;;  %v2415_v50 = vunpack.c.h.bf16 %v2752_v48  ;;  %v2414_v0 = vunpack.c.l.bf16 %v2752_v48 }
 0x507   :  { %1040 = vmatpush1.msra.mxu0 %v1009_v51  ;;  %v2409_v51 = vld [vmem:[#allocation9 + $0x200] sm:$0xff]  }
 0x508   :  { %1041 = vmatprep.subr.mxu0 %v1008_v52  ;;  %v2411_v52 = vunpack.c.h.bf16 %v2409_v51 }
 0x509   :  { %1042 = vmatpush1.msra.mxu0 %v1007_v53  ;;  %v2410_v53 = vunpack.c.l.bf16 %v2409_v51 }
 0x50a   :  { %1043 = vmatprep.subr.mxu0 %v1006_v55  ;;  %v2764_v55 = vld [vmem:[#allocation9 + $0x270] sm:$0xff]  }
 0x50b   :  { %1044 = vmatpush1.msra.mxu0 %v1005_v56  ;;  %v2471_v56 = vunpack.c.h.bf16 %v2765_v54  ;;  %v2466_v60 = vunpack.c.l.bf16 %v2764_v55 }
 0x50c   :  { %1045 = vmatprep.subr.mxu0 %v1004_v58  ;;  %v2467_v58 = vunpack.c.h.bf16 %v2764_v55 }
 0x50d   :  { %1046 = vmatpush1.msra.mxu0 %v1003_v59  ;;  %v2763_v59 = vld [vmem:[#allocation9 + $0x268] sm:$0xff]  }
 0x50e   :  { %1047 = vmatprep.subr.mxu0 %v1002_v61  ;;  %v2463_v61 = vunpack.c.h.bf16 %v2763_v59  ;;  %v2462_v63 = vunpack.c.l.bf16 %v2763_v59 }
 0x50f   :  { %1048 = vmatpush1.msra.mxu0 %v1001_v62  ;;  %v2762_v62 = vld [vmem:[#allocation9 + $0x260] sm:$0xff]  }
 0x510   :  { %1049 = vmatprep.subr.mxu0 %v1000_v1  ;;  %v2459_v1 = vunpack.c.h.bf16 %v2762_v62  ;;  %v2458_v3 = vunpack.c.l.bf16 %v2762_v62  ;;  %v2778_v62 = vld [vmem:[#allocation9 + $0x2f0] sm:$0xff]  }
 0x511   :  { %1050 = vmatpush1.msra.mxu0 %v999_v2  ;;  %v2761_v2 = vld [vmem:[#allocation9 + $0x258] sm:$0xff]  }
 0x512   :  { %1051 = vmatprep.subr.mxu0 %v998_v4  ;;  %v2455_v4 = vunpack.c.h.bf16 %v2761_v2  ;;  %v2454_v6 = vunpack.c.l.bf16 %v2761_v2  ;;  %v2531_v2 = vunpack.c.h.bf16 %v2778_v62 }
 0x513   :  { %1052 = vmatpush1.msra.mxu0 %v997_v5  ;;  %v2760_v5 = vld [vmem:[#allocation9 + $0x250] sm:$0xff]  }
 0x514   :  { %1053 = vmatprep.subr.mxu0 %v996_v7  ;;  %v2451_v7 = vunpack.c.h.bf16 %v2760_v5  ;;  %v2450_v9 = vunpack.c.l.bf16 %v2760_v5 }
 0x515   :  { %1054 = vmatpush1.msra.mxu0 %v995_v8  ;;  %v2759_v8 = vld [vmem:[#allocation9 + $0x248] sm:$0xff]  }
 0x516   :  { %1055 = vmatprep.subr.mxu0 %v994_v10  ;;  %v2447_v10 = vunpack.c.h.bf16 %v2759_v8 }
 0x517   :  { %1056 = vmatpush1.msra.mxu0 %v993_v11  ;;  %v1021_v11 = vlaneseq }
 0x518   :  { %1057 = vmatprep.subr.mxu0 %v992_v13 }
 0x519   :  { %1058 = vmatpush1.msra.mxu0 %v991_v14  ;;  %v1022_v12 = vshrl.u32 %v1021_v11, 7  ;;  %v1019_v14 = vld [vmem:[%s4294_s5] sm:$0x3]  ;;  %s3897_s5 = smov [#allocation14]  }
 0x51a   :  { %1059 = vmatprep.subr.mxu0 %v990_v15  ;;  %s2107_s9 = sshll.u32 %s3897_s5, 4  ;;  %s2108_s9 = int_to_ptr.vmem [resolvable:$true] %s2107_s9 }
 0x51b   :  { %1060 = vmatpush1.msra.mxu0 %v989_v16  ;;  %v1023_v13 = vsub.s32 0, %v1022_v12  ;;  %v1027_v15 = vsub.s32 1, %v1022_v12  ;;  %v2774_v12 = vld [vmem:[#allocation9 + $0x2d0] sm:$0xff]   ;;  %s3816_s10 = scalar_lea.vmem %s2108_s9, 128  ;;  %p3821_p12 = scmp.lt.s32.totalorder %s2108_s9, %s2108_s9 }
 0x51c   :  { %1061 = vmatprep.subr.mxu0 %v988_v24  ;;  %p3817_p11 = scmp.ne.s32.totalorder %s2108_s9, %s3816_s10  ;;  %p3822_p13 = scmp.lt.s32.totalorder %s3816_s10, %s3816_s10 }
 0x51d   :  { %1062 = vmatpush1.msra.mxu0 %v987_v25  ;;  %v1024_v16 = vrot.slane %v1019_v14, %v1023_v13  ;;  %v1102_v25 = vld [vmem:[#allocation3] sm:$0xff] }
 0x51e   :  { %3419 = vmatprep.subr.mxu0 %v4114_v22  ;;  %p3823_p0 = por %p3822_p13, %p3821_p12 }
 0x520   :  { %p3824_p1 = pnand %p3823_p0, %p3817_p11 }
 0x5be   :  { %v858_v18 = vpop.f32.mrf.mxu0 }
 0x5bf   :  { %v859_v19 = vadd.f32 %v2141_v17, %v858_v18  ;;  %v1028_v17 = vrot.slane %v1019_v14, %v1027_v15  ;;  %v2515_v14 = vunpack.c.h.bf16 %v2774_v12  ;;  %v2773_v15 = vld [vmem:[#allocation9 + $0x2c8] sm:$0xff]  }
 0x5c0   :  { %v3348_v20 = vpop.f32.mrf.mxu0 }
 0x5c1   :  { %v862_v21 = vmax.f32 %v859_v19, 0.0 }
 0x5c3   :  { %3382 = vmatmul.mubr.f32.vlgmr.msra.gmra.mxu1 %v862_v21 }
 0x5c4   :  { %3416 = vmatprep.mubr.msk.f32.mxu1 %vm3896_vm0, %v4114_v22  ;;  %3385 = vmatpush3.msra.mxu1 %v2439_v27 }
 0x5c5   :  { %3386 = vmatprep.subr.mxu1 %v4114_v22 }
 0x5c6   :  { %3387 = vmatpush3.msra.mxu1 %v2438_v28 }
 0x5c7   :  { %3388 = vmatprep.subr.mxu1 %v4114_v22 }
 0x5c8   :  { %3389 = vmatpush3.msra.mxu1 %v2435_v34  ;;  %v2771_v34 = vld [vmem:[#allocation9 + $0x2b0] sm:$0xff]  }
 0x5c9   :  { %3390 = vmatprep.subr.mxu1 %v4114_v22  ;;  %v2498_v39 = vunpack.c.l.bf16 %v2771_v34 }
 0x5ca   :  { %3391 = vmatpush3.msra.mxu1 %v2434_v35  ;;  %v2503_v35 = vunpack.c.h.bf16 %v2772_v33  ;;  %v2784_v33 = vld [vmem:[#allocation9 + $0x328] sm:$0xff]  }
 0x5cb   :  { %3392 = vmatprep.subr.mxu1 %v4114_v22 }
 0x5cc   :  { %3393 = vmatpush3.msra.mxu1 %v2431_v37  ;;  %v2499_v37 = vunpack.c.h.bf16 %v2771_v34 }
 0x5cd   :  { %3394 = vmatprep.subr.mxu1 %v4114_v22 }
 0x5ce   :  { %3395 = vmatpush3.msra.mxu1 %v2430_v38  ;;  %v2770_v38 = vld [vmem:[#allocation9 + $0x2a8] sm:$0xff]  }
 0x5cf   :  { %3396 = vmatprep.subr.mxu1 %v4114_v22  ;;  %v2494_v42 = vunpack.c.l.bf16 %v2770_v38 }
 0x5d0   :  { %3397 = vmatpush3.msra.mxu1 %v2427_v40  ;;  %v2495_v40 = vunpack.c.h.bf16 %v2770_v38 }
 0x5d1   :  { %3398 = vmatprep.subr.mxu1 %v4114_v22 }
 0x5d2   :  { %3399 = vmatpush3.msra.mxu1 %v2426_v41  ;;  %v2769_v41 = vld [vmem:[#allocation9 + $0x2a0] sm:$0xff]  }
 0x5d3   :  { %3400 = vmatprep.subr.mxu1 %v4114_v22  ;;  %v2491_v43 = vunpack.c.h.bf16 %v2769_v41 }
 0x5d4   :  { %3401 = vmatpush3.msra.mxu1 %v2423_v44  ;;  %v2768_v44 = vld [vmem:[#allocation9 + $0x298] sm:$0xff]  }
 0x5d5   :  { %3402 = vmatprep.subr.mxu1 %v4114_v22  ;;  %v2487_v46 = vunpack.c.h.bf16 %v2768_v44  ;;  %v2486_v48 = vunpack.c.l.bf16 %v2768_v44 }
 0x5d6   :  { %3403 = vmatpush3.msra.mxu1 %v2422_v45  ;;  %v2490_v45 = vunpack.c.l.bf16 %v2769_v41 }
 0x5d7   :  { %3404 = vmatprep.subr.mxu1 %v4114_v22 }
 0x5d8   :  { %3405 = vmatpush3.msra.mxu1 %v2419_v47  ;;  %v2767_v47 = vld [vmem:[#allocation9 + $0x290] sm:$0xff]  }
 0x5d9   :  { %3406 = vmatprep.subr.mxu1 %v4114_v22  ;;  %v2482_v51 = vunpack.c.l.bf16 %v2767_v47 }
 0x5da   :  { %3407 = vmatpush3.msra.mxu1 %v2418_v49  ;;  %v2483_v49 = vunpack.c.h.bf16 %v2767_v47 }
 0x5db   :  { %3408 = vmatprep.subr.mxu1 %v4114_v22 }
 0x5dc   :  { %3409 = vmatpush3.msra.mxu1 %v2415_v50  ;;  %v2766_v50 = vld [vmem:[#allocation9 + $0x288] sm:$0xff]  }
 0x5dd   :  { %3410 = vmatprep.subr.mxu1 %v4114_v22 }
 0x5de   :  { %3411 = vmatpush3.msra.mxu1 %v2414_v0  ;;  %v2479_v0 = vunpack.c.h.bf16 %v2766_v50 }
 0x5df   :  { %3412 = vmatprep.subr.mxu1 %v4114_v22 }
 0x5e0   :  { %3413 = vmatpush3.msra.mxu1 %v2411_v52  ;;  %v2143_v52 = vld [vmem:[#allocation10 + $0x8] ss:$0 sm:$0xff] }
 0x5e1   :  { %3414 = vmatprep.subr.mxu1 %v4114_v22 }
 0x5e2   :  { %3415 = vmatpush3.msra.mxu1 %v2410_v53 }
 0x5e3   :  { %3454 = vmatprep.subr.mxu1 %v4114_v22 }
 0x683   :  { %v967_v30 = vpop.f32.mrf.mxu1 }
 0x684   :  { %v968_v31 = vadd.f32 %v2142_v29, %v967_v30  ;;  %v2446_v29 = vunpack.c.l.bf16 %v2759_v8  ;;  %v2441_v30 = vld [vmem:[#allocation9 + $0x240] sm:$0xff]  }
 0x685   :  { %v3383_v32 = vpop.f32.mrf.mxu1 }
 0x686   :  { %1096 = vmatmul.mubr.f32.vlgmr.msra.gmra.mxu0 %v968_v31  ;;  %v2443_v31 = vunpack.c.h.bf16 %v2441_v30  ;;  %v2442_v32 = vunpack.c.l.bf16 %v2441_v30 }
 0x687   :  { %3451 = vmatprep.mubr.msk.f32.mxu0 %vm3896_vm0, %v4114_v22  ;;  %3420 = vmatpush3.msra.mxu0 %v2471_v56 }
 0x688   :  { %3421 = vmatprep.subr.mxu0 %v4114_v22 }
 0x689   :  { %3422 = vmatpush3.msra.mxu0 %v2470_v57  ;;  %v2478_v57 = vunpack.c.l.bf16 %v2766_v50 }
 0x68a   :  { %3423 = vmatprep.subr.mxu0 %v4114_v22 }
 0x68b   :  { %3424 = vmatpush3.msra.mxu0 %v2467_v58  ;;  %v2473_v58 = vld [vmem:[#allocation9 + $0x280] sm:$0xff]  }
 0x68c   :  { %3425 = vmatprep.subr.mxu0 %v4114_v22  ;;  %v2475_v59 = vunpack.c.h.bf16 %v2473_v58 }
 0x68d   :  { %3426 = vmatpush3.msra.mxu0 %v2466_v60  ;;  %v2474_v60 = vunpack.c.l.bf16 %v2473_v58 }
 0x68e   :  { %3427 = vmatprep.subr.mxu0 %v4114_v22 }
 0x68f   :  { %3428 = vmatpush3.msra.mxu0 %v2463_v61  ;;  %v2779_v61 = vld [vmem:[#allocation9 + $0x2f8] sm:$0xff]  }
 0x690   :  { %3429 = vmatprep.subr.mxu0 %v4114_v22 }
 0x691   :  { %3430 = vmatpush3.msra.mxu0 %v2462_v63  ;;  %v2535_v63 = vunpack.c.h.bf16 %v2779_v61 }
 0x692   :  { %3431 = vmatprep.subr.mxu0 %v4114_v22 }
 0x693   :  { %3432 = vmatpush3.msra.mxu0 %v2459_v1  ;;  %v2534_v1 = vunpack.c.l.bf16 %v2779_v61  ;;  %v2791_v61 = vld [vmem:[#allocation9 + $0x368] sm:$0xff]  }
 0x694   :  { %3433 = vmatprep.subr.mxu0 %v4114_v22 }
 0x695   :  { %3434 = vmatpush3.msra.mxu0 %v2458_v3  ;;  %v2777_v3 = vld [vmem:[#allocation9 + $0x2e8] sm:$0xff]  }
 0x696   :  { %3435 = vmatprep.subr.mxu0 %v4114_v22  ;;  %v2527_v5 = vunpack.c.h.bf16 %v2777_v3 }
 0x697   :  { %3436 = vmatpush3.msra.mxu0 %v2455_v4  ;;  %v2530_v4 = vunpack.c.l.bf16 %v2778_v62 }
 0x698   :  { %3437 = vmatprep.subr.mxu0 %v4114_v22 }
 0x699   :  { %3438 = vmatpush3.msra.mxu0 %v2454_v6  ;;  %v2776_v6 = vld [vmem:[#allocation9 + $0x2e0] sm:$0xff]  }
 0x69a   :  { %3439 = vmatprep.subr.mxu0 %v4114_v22  ;;  %v2523_v8 = vunpack.c.h.bf16 %v2776_v6 }
 0x69b   :  { %3440 = vmatpush3.msra.mxu0 %v2451_v7  ;;  %v2526_v7 = vunpack.c.l.bf16 %v2777_v3 }
 0x69c   :  { %3441 = vmatprep.subr.mxu0 %v4114_v22 }
 0x69d   :  { %3442 = vmatpush3.msra.mxu0 %v2450_v9  ;;  %v2775_v9 = vld [vmem:[#allocation9 + $0x2d8] sm:$0xff]  }
 0x69e   :  { %3443 = vmatprep.subr.mxu0 %v4114_v22  ;;  %v2519_v11 = vunpack.c.h.bf16 %v2775_v9  ;;  %v2518_v13 = vunpack.c.l.bf16 %v2775_v9 }
 0x69f   :  { %3444 = vmatpush3.msra.mxu0 %v2447_v10  ;;  %v2522_v10 = vunpack.c.l.bf16 %v2776_v6 }
 0x6a0   :  { %3445 = vmatprep.subr.mxu0 %v4114_v22 }
 0x6a1   :  { %3446 = vmatpush3.msra.mxu0 %v2446_v29  ;;  %v2785_v29 = vld [vmem:[#allocation9 + $0x330] sm:$0xff]  }
 0x6a2   :  { %3447 = vmatprep.subr.mxu0 %v4114_v22  ;;  %v2562_v34 = vunpack.c.l.bf16 %v2785_v29 }
 0x6a3   :  { %3448 = vmatpush3.msra.mxu0 %v2443_v31 }
 0x6a4   :  { %3449 = vmatprep.subr.mxu0 %v4114_v22 }
 0x6a5   :  { %3450 = vmatpush3.msra.mxu0 %v2442_v32  ;;  %v2563_v32 = vunpack.c.h.bf16 %v2785_v29 }
 0x6a6   :  { %3489 = vmatprep.subr.mxu0 %v4114_v22 }
 0x746   :  { %v1097_v18 = vpop.f32.mrf.mxu0 }
 0x747   :  { %v1098_v19 = vadd.f32 %v1097_v18, %v1024_v16  ;;  %v2514_v16 = vunpack.c.l.bf16 %v2774_v12  ;;  %v2144_v18 = vld [vmem:[#allocation10 + $0x9] ss:$0 sm:$0xff] }
 0x748   :  { %v1099_v20 = vpop.f32.mrf.mxu0 }
 0x749   :  { %2089 = vst [vmem:[#allocation14] sm:$0xff] %v1098_v19  ;;  %v1100_v21 = vadd.f32 %v1099_v20, %v1028_v17  ;;  %v2511_v17 = vunpack.c.h.bf16 %v2773_v15 }
 0x74b   :  { %v1103_v23 = vmul.f32 0.5, %v1100_v21  ;;  %2090 = vst [vmem:[#allocation16] sm:$0xff] %v1100_v21 }
 0x74d   :  { %v1104_v24 = vmul.f32 1.442695, %v1103_v23 }
 0x74f   :  { %3713 = vpow2.f32 %v1104_v24  ;;  %v2510_v24 = vunpack.c.l.bf16 %v2773_v15 }
 0x75c   :  { %v3714_v26 = vpop.eup %3713 }
 0x75d   :  { %v1106_v27 = vmul.f32 %v3714_v26, %v1102_v25  ;;  %v2505_v25 = vld [vmem:[#allocation9 + $0x2c0] sm:$0xff]  }
 0x75e   :  { %v2507_v26 = vunpack.c.h.bf16 %v2505_v25 }
 0x75f   :  { %v1107_v28 = vadd.f32 %v1106_v27, %v1098_v19  ;;  %v2506_v27 = vunpack.c.l.bf16 %v2505_v25 }
 0x761   :  { %3417 = vmatmul.mubr.f32.vlgmr.msra.gmra.mxu1 %v1107_v28  ;;  %v2786_v28 = vld [vmem:[#allocation9 + $0x338] sm:$0xff]  }
 0x762   :  { %3486 = vmatprep.mubr.msk.f32.mxu1 %vm3896_vm0, %v4114_v22  ;;  %3455 = vmatpush3.msra.mxu1 %v2503_v35  ;;  %v2567_v30 = vunpack.c.h.bf16 %v2786_v28  ;;  %v2566_v31 = vunpack.c.l.bf16 %v2786_v28  ;;  %v2559_v35 = vunpack.c.h.bf16 %v2784_v33  ;;  %v2798_v28 = vld [vmem:[#allocation9 + $0x3a8] sm:$0xff]  }
 0x763   :  { %3456 = vmatprep.subr.mxu1 %v4114_v22 }
 0x764   :  { %3457 = vmatpush3.msra.mxu1 %v2502_v36  ;;  %v2783_v36 = vld [vmem:[#allocation9 + $0x320] sm:$0xff]  }
 0x765   :  { %3458 = vmatprep.subr.mxu1 %v4114_v22  ;;  %v2555_v38 = vunpack.c.h.bf16 %v2783_v36 }
 0x766   :  { %3459 = vmatpush3.msra.mxu1 %v2499_v37  ;;  %v2558_v37 = vunpack.c.l.bf16 %v2784_v33 }
 0x767   :  { %3460 = vmatprep.subr.mxu1 %v4114_v22 }
 0x768   :  { %3461 = vmatpush3.msra.mxu1 %v2498_v39  ;;  %v2782_v39 = vld [vmem:[#allocation9 + $0x318] sm:$0xff]  }
 0x769   :  { %3462 = vmatprep.subr.mxu1 %v4114_v22  ;;  %v2551_v41 = vunpack.c.h.bf16 %v2782_v39 }
 0x76a   :  { %3463 = vmatpush3.msra.mxu1 %v2495_v40  ;;  %v2554_v40 = vunpack.c.l.bf16 %v2783_v36 }
 0x76b   :  { %3464 = vmatprep.subr.mxu1 %v4114_v22 }
 0x76c   :  { %3465 = vmatpush3.msra.mxu1 %v2494_v42  ;;  %v2781_v42 = vld [vmem:[#allocation9 + $0x310] sm:$0xff]  }
 0x76d   :  { %3466 = vmatprep.subr.mxu1 %v4114_v22  ;;  %v2547_v44 = vunpack.c.h.bf16 %v2781_v42 }
 0x76e   :  { %3467 = vmatpush3.msra.mxu1 %v2491_v43  ;;  %v2550_v43 = vunpack.c.l.bf16 %v2782_v39 }
 0x76f   :  { %3468 = vmatprep.subr.mxu1 %v4114_v22 }
 0x770   :  { %3469 = vmatpush3.msra.mxu1 %v2490_v45  ;;  %v2780_v45 = vld [vmem:[#allocation9 + $0x308] sm:$0xff]  }
 0x771   :  { %3470 = vmatprep.subr.mxu1 %v4114_v22  ;;  %v2543_v47 = vunpack.c.h.bf16 %v2780_v45 }
 0x772   :  { %3471 = vmatpush3.msra.mxu1 %v2487_v46  ;;  %v2546_v46 = vunpack.c.l.bf16 %v2781_v42 }
 0x773   :  { %3472 = vmatprep.subr.mxu1 %v4114_v22 }
 0x774   :  { %3473 = vmatpush3.msra.mxu1 %v2486_v48  ;;  %v2145_v48 = vld [vmem:[#allocation10 + $0xa] ss:$0 sm:$0xff] }
 0x775   :  { %3474 = vmatprep.subr.mxu1 %v4114_v22 }
 0x776   :  { %3475 = vmatpush3.msra.mxu1 %v2483_v49 }
 0x777   :  { %3476 = vmatprep.subr.mxu1 %v4114_v22 }
 0x778   :  { %3477 = vmatpush3.msra.mxu1 %v2482_v51 }
 0x779   :  { %3478 = vmatprep.subr.mxu1 %v4114_v22 }
 0x77a   :  { %3479 = vmatpush3.msra.mxu1 %v2479_v0 }
 0x77b   :  { %3480 = vmatprep.subr.mxu1 %v4114_v22 }
 0x77c   :  { %3481 = vmatpush3.msra.mxu1 %v2478_v57  ;;  %v2792_v57 = vld [vmem:[#allocation9 + $0x370] sm:$0xff]  }
 0x77d   :  { %3482 = vmatprep.subr.mxu1 %v4114_v22  ;;  %v2594_v62 = vunpack.c.l.bf16 %v2792_v57 }
 0x77e   :  { %3483 = vmatpush3.msra.mxu1 %v2475_v59 }
 0x77f   :  { %3484 = vmatprep.subr.mxu1 %v4114_v22 }
 0x780   :  { %3485 = vmatpush3.msra.mxu1 %v2474_v60  ;;  %v2595_v60 = vunpack.c.h.bf16 %v2792_v57 }
 0x781   :  { %3524 = vmatprep.subr.mxu1 %v4114_v22 }
 0x821   :  { %v1212_v53 = vpop.f32.mrf.mxu1 }
 0x822   :  { %v1213_v54 = vadd.f32 %v2143_v52, %v1212_v53  ;;  %v2542_v52 = vunpack.c.l.bf16 %v2780_v45  ;;  %v2537_v53 = vld [vmem:[#allocation9 + $0x300] sm:$0xff]  }
 0x823   :  { %v3418_v55 = vpop.f32.mrf.mxu1 }
 0x824   :  { %v1216_v56 = vmax.f32 %v1213_v54, 0.0  ;;  %v2539_v54 = vunpack.c.h.bf16 %v2537_v53  ;;  %v2538_v55 = vunpack.c.l.bf16 %v2537_v53 }
 0x826   :  { %3452 = vmatmul.mubr.f32.vlgmr.msra.gmra.mxu0 %v1216_v56  ;;  %v2793_v56 = vld [vmem:[#allocation9 + $0x378] sm:$0xff]  }
 0x827   :  { %3521 = vmatprep.mubr.msk.f32.mxu0 %vm3896_vm0, %v4114_v22  ;;  %3490 = vmatpush3.msra.mxu0 %v2535_v63  ;;  %v2599_v58 = vunpack.c.h.bf16 %v2793_v56  ;;  %v2598_v59 = vunpack.c.l.bf16 %v2793_v56  ;;  %v2591_v63 = vunpack.c.h.bf16 %v2791_v61  ;;  %v2805_v56 = vld [vmem:[#allocation9 + $0x3e8] sm:$0xff]  }
 0x828   :  { %3491 = vmatprep.subr.mxu0 %v4114_v22 }
 0x829   :  { %3492 = vmatpush3.msra.mxu0 %v2534_v1  ;;  %v2790_v1 = vld [vmem:[#allocation9 + $0x360] sm:$0xff]  }
 0x82a   :  { %3493 = vmatprep.subr.mxu0 %v4114_v22  ;;  %v2587_v3 = vunpack.c.h.bf16 %v2790_v1 }
 0x82b   :  { %3494 = vmatpush3.msra.mxu0 %v2531_v2  ;;  %v2590_v2 = vunpack.c.l.bf16 %v2791_v61 }
 0x82c   :  { %3495 = vmatprep.subr.mxu0 %v4114_v22 }
 0x82d   :  { %3496 = vmatpush3.msra.mxu0 %v2530_v4  ;;  %v2789_v4 = vld [vmem:[#allocation9 + $0x358] sm:$0xff]  }
 0x82e   :  { %3497 = vmatprep.subr.mxu0 %v4114_v22  ;;  %v2583_v6 = vunpack.c.h.bf16 %v2789_v4 }
 0x82f   :  { %3498 = vmatpush3.msra.mxu0 %v2527_v5  ;;  %v2586_v5 = vunpack.c.l.bf16 %v2790_v1 }
 0x830   :  { %3499 = vmatprep.subr.mxu0 %v4114_v22 }
 0x831   :  { %3500 = vmatpush3.msra.mxu0 %v2526_v7  ;;  %v2788_v7 = vld [vmem:[#allocation9 + $0x350] sm:$0xff]  }
 0x832   :  { %3501 = vmatprep.subr.mxu0 %v4114_v22  ;;  %v2579_v9 = vunpack.c.h.bf16 %v2788_v7 }
 0x833   :  { %3502 = vmatpush3.msra.mxu0 %v2523_v8  ;;  %v2582_v8 = vunpack.c.l.bf16 %v2789_v4 }
 0x834   :  { %3503 = vmatprep.subr.mxu0 %v4114_v22 }
 0x835   :  { %3504 = vmatpush3.msra.mxu0 %v2522_v10  ;;  %v2787_v10 = vld [vmem:[#allocation9 + $0x348] sm:$0xff]  }
 0x836   :  { %3505 = vmatprep.subr.mxu0 %v4114_v22  ;;  %v2575_v12 = vunpack.c.h.bf16 %v2787_v10 }
 0x837   :  { %3506 = vmatpush3.msra.mxu0 %v2519_v11  ;;  %v2578_v11 = vunpack.c.l.bf16 %v2788_v7 }
 0x838   :  { %3507 = vmatprep.subr.mxu0 %v4114_v22 }
 0x839   :  { %3508 = vmatpush3.msra.mxu0 %v2518_v13  ;;  %v2146_v13 = vld [vmem:[#allocation10 + $0xb] ss:$0 sm:$0xff] }
 0x83a   :  { %3509 = vmatprep.subr.mxu0 %v4114_v22 }
 0x83b   :  { %3510 = vmatpush3.msra.mxu0 %v2515_v14 }
 0x83c   :  { %3511 = vmatprep.subr.mxu0 %v4114_v22 }
 0x83d   :  { %3512 = vmatpush3.msra.mxu0 %v2514_v16 }
 0x83e   :  { %3513 = vmatprep.subr.mxu0 %v4114_v22 }
 0x83f   :  { %3514 = vmatpush3.msra.mxu0 %v2511_v17 }
 0x840   :  { %3515 = vmatprep.subr.mxu0 %v4114_v22 }
 0x841   :  { %3516 = vmatpush3.msra.mxu0 %v2510_v24  ;;  %v2799_v24 = vld [vmem:[#allocation9 + $0x3b0] sm:$0xff]  }
 0x842   :  { %3517 = vmatprep.subr.mxu0 %v4114_v22  ;;  %v2626_v29 = vunpack.c.l.bf16 %v2799_v24 }
 0x843   :  { %3518 = vmatpush3.msra.mxu0 %v2507_v26 }
 0x844   :  { %3519 = vmatprep.subr.mxu0 %v4114_v22 }
 0x845   :  { %3520 = vmatpush3.msra.mxu0 %v2506_v27  ;;  %v2627_v27 = vunpack.c.h.bf16 %v2799_v24 }
 0x846   :  { %3559 = vmatprep.subr.mxu0 %v4114_v22 }
 0x8e6   :  { %v1321_v19 = vpop.f32.mrf.mxu0 }
 0x8e7   :  { %v1322_v20 = vadd.f32 %v2144_v18, %v1321_v19  ;;  %v2574_v18 = vunpack.c.l.bf16 %v2787_v10  ;;  %v2569_v19 = vld [vmem:[#allocation9 + $0x340] sm:$0xff]  }
 0x8e8   :  { %v3453_v21 = vpop.f32.mrf.mxu0 }
 0x8e9   :  { %v1325_v23 = vmax.f32 %v1322_v20, 0.0  ;;  %v2571_v20 = vunpack.c.h.bf16 %v2569_v19  ;;  %v2570_v21 = vunpack.c.l.bf16 %v2569_v19 }
 0x8eb   :  { %3487 = vmatmul.mubr.f32.vlgmr.msra.gmra.mxu1 %v1325_v23  ;;  %v2800_v23 = vld [vmem:[#allocation9 + $0x3b8] sm:$0xff]  }
 0x8ec   :  { %3556 = vmatprep.mubr.msk.f32.mxu1 %vm3896_vm0, %v4114_v22  ;;  %3525 = vmatpush3.msra.mxu1 %v2567_v30  ;;  %v2631_v25 = vunpack.c.h.bf16 %v2800_v23  ;;  %v2630_v26 = vunpack.c.l.bf16 %v2800_v23  ;;  %v2623_v30 = vunpack.c.h.bf16 %v2798_v28  ;;  %v2812_v23 = vld [vmem:[#allocation9 + $0x428] sm:$0xff]  }
 0x8ed   :  { %3526 = vmatprep.subr.mxu1 %v4114_v22 }
 0x8ee   :  { %3527 = vmatpush3.msra.mxu1 %v2566_v31  ;;  %v2797_v31 = vld [vmem:[#allocation9 + $0x3a0] sm:$0xff]  }
 0x8ef   :  { %3528 = vmatprep.subr.mxu1 %v4114_v22  ;;  %v2619_v33 = vunpack.c.h.bf16 %v2797_v31 }
 0x8f0   :  { %3529 = vmatpush3.msra.mxu1 %v2563_v32  ;;  %v2622_v32 = vunpack.c.l.bf16 %v2798_v28 }
 0x8f1   :  { %3530 = vmatprep.subr.mxu1 %v4114_v22 }
 0x8f2   :  { %3531 = vmatpush3.msra.mxu1 %v2562_v34  ;;  %v2796_v34 = vld [vmem:[#allocation9 + $0x398] sm:$0xff]  }
 0x8f3   :  { %3532 = vmatprep.subr.mxu1 %v4114_v22  ;;  %v2615_v36 = vunpack.c.h.bf16 %v2796_v34 }
 0x8f4   :  { %3533 = vmatpush3.msra.mxu1 %v2559_v35  ;;  %v2618_v35 = vunpack.c.l.bf16 %v2797_v31 }
 0x8f5   :  { %3534 = vmatprep.subr.mxu1 %v4114_v22 }
 0x8f6   :  { %3535 = vmatpush3.msra.mxu1 %v2558_v37  ;;  %v2795_v37 = vld [vmem:[#allocation9 + $0x390] sm:$0xff]  }
 0x8f7   :  { %3536 = vmatprep.subr.mxu1 %v4114_v22  ;;  %v2611_v39 = vunpack.c.h.bf16 %v2795_v37 }
 0x8f8   :  { %3537 = vmatpush3.msra.mxu1 %v2555_v38  ;;  %v2614_v38 = vunpack.c.l.bf16 %v2796_v34 }
 0x8f9   :  { %3538 = vmatprep.subr.mxu1 %v4114_v22 }
 0x8fa   :  { %3539 = vmatpush3.msra.mxu1 %v2554_v40  ;;  %v2794_v40 = vld [vmem:[#allocation9 + $0x388] sm:$0xff]  }
 0x8fb   :  { %3540 = vmatprep.subr.mxu1 %v4114_v22  ;;  %v2607_v42 = vunpack.c.h.bf16 %v2794_v40 }
 0x8fc   :  { %3541 = vmatpush3.msra.mxu1 %v2551_v41  ;;  %v2610_v41 = vunpack.c.l.bf16 %v2795_v37 }
 0x8fd   :  { %3542 = vmatprep.subr.mxu1 %v4114_v22 }
 0x8fe   :  { %3543 = vmatpush3.msra.mxu1 %v2550_v43  ;;  %v2147_v43 = vld [vmem:[#allocation10 + $0xc] ss:$0 sm:$0xff] }
 0x8ff   :  { %3544 = vmatprep.subr.mxu1 %v4114_v22 }
 0x900   :  { %3545 = vmatpush3.msra.mxu1 %v2547_v44 }
 0x901   :  { %3546 = vmatprep.subr.mxu1 %v4114_v22 }
 0x902   :  { %3547 = vmatpush3.msra.mxu1 %v2546_v46 }
 0x903   :  { %3548 = vmatprep.subr.mxu1 %v4114_v22 }
 0x904   :  { %3549 = vmatpush3.msra.mxu1 %v2543_v47 }
 0x905   :  { %3550 = vmatprep.subr.mxu1 %v4114_v22 }
 0x906   :  { %3551 = vmatpush3.msra.mxu1 %v2542_v52  ;;  %v2806_v52 = vld [vmem:[#allocation9 + $0x3f0] sm:$0xff]  }
 0x907   :  { %3552 = vmatprep.subr.mxu1 %v4114_v22  ;;  %v2658_v57 = vunpack.c.l.bf16 %v2806_v52 }
 0x908   :  { %3553 = vmatpush3.msra.mxu1 %v2539_v54 }
 0x909   :  { %3554 = vmatprep.subr.mxu1 %v4114_v22 }
 0x90a   :  { %3555 = vmatpush3.msra.mxu1 %v2538_v55  ;;  %v2659_v55 = vunpack.c.h.bf16 %v2806_v52 }
 0x90b   :  { %3594 = vmatprep.subr.mxu1 %v4114_v22 }
 0x9ab   :  { %v1430_v49 = vpop.f32.mrf.mxu1 }
 0x9ac   :  { %v1431_v50 = vadd.f32 %v2145_v48, %v1430_v49  ;;  %v2606_v48 = vunpack.c.l.bf16 %v2794_v40  ;;  %v2601_v49 = vld [vmem:[#allocation9 + $0x380] sm:$0xff]  }
 0x9ad   :  { %v3488_v51 = vpop.f32.mrf.mxu1 }
 0x9ae   :  { %v1434_v0 = vmax.f32 %v1431_v50, 0.0  ;;  %v2603_v50 = vunpack.c.h.bf16 %v2601_v49  ;;  %v2602_v51 = vunpack.c.l.bf16 %v2601_v49 }
 0x9b0   :  { %3522 = vmatmul.mubr.f32.vlgmr.msra.gmra.mxu0 %v1434_v0  ;;  %v2807_v0 = vld [vmem:[#allocation9 + $0x3f8] sm:$0xff]  }
 0x9b1   :  { %3591 = vmatprep.mubr.msk.f32.mxu0 %vm3896_vm0, %v4114_v22  ;;  %3560 = vmatpush3.msra.mxu0 %v2599_v58  ;;  %v2663_v53 = vunpack.c.h.bf16 %v2807_v0  ;;  %v2662_v54 = vunpack.c.l.bf16 %v2807_v0  ;;  %v2655_v58 = vunpack.c.h.bf16 %v2805_v56 }
 0x9b2   :  { %3561 = vmatprep.subr.mxu0 %v4114_v22 }
 0x9b3   :  { %3562 = vmatpush3.msra.mxu0 %v2598_v59  ;;  %v2804_v59 = vld [vmem:[#allocation9 + $0x3e0] sm:$0xff]  }
 0x9b4   :  { %3563 = vmatprep.subr.mxu0 %v4114_v22  ;;  %v2651_v61 = vunpack.c.h.bf16 %v2804_v59 }
 0x9b5   :  { %3564 = vmatpush3.msra.mxu0 %v2595_v60  ;;  %v2654_v60 = vunpack.c.l.bf16 %v2805_v56 }
 0x9b6   :  { %3565 = vmatprep.subr.mxu0 %v4114_v22 }
 0x9b7   :  { %3566 = vmatpush3.msra.mxu0 %v2594_v62  ;;  %v2803_v62 = vld [vmem:[#allocation9 + $0x3d8] sm:$0xff]  }
 0x9b8   :  { %3567 = vmatprep.subr.mxu0 %v4114_v22  ;;  %v2647_v1 = vunpack.c.h.bf16 %v2803_v62 }
 0x9b9   :  { %3568 = vmatpush3.msra.mxu0 %v2591_v63  ;;  %v2650_v63 = vunpack.c.l.bf16 %v2804_v59 }
 0x9ba   :  { %3569 = vmatprep.subr.mxu0 %v4114_v22 }
 0x9bb   :  { %3570 = vmatpush3.msra.mxu0 %v2590_v2  ;;  %v2802_v2 = vld [vmem:[#allocation9 + $0x3d0] sm:$0xff]  }
 0x9bc   :  { %3571 = vmatprep.subr.mxu0 %v4114_v22  ;;  %v2643_v4 = vunpack.c.h.bf16 %v2802_v2 }
 0x9bd   :  { %3572 = vmatpush3.msra.mxu0 %v2587_v3  ;;  %v2646_v3 = vunpack.c.l.bf16 %v2803_v62 }
 0x9be   :  { %3573 = vmatprep.subr.mxu0 %v4114_v22 }
 0x9bf   :  { %3574 = vmatpush3.msra.mxu0 %v2586_v5  ;;  %v2801_v5 = vld [vmem:[#allocation9 + $0x3c8] sm:$0xff]  }
 0x9c0   :  { %3575 = vmatprep.subr.mxu0 %v4114_v22  ;;  %v2639_v7 = vunpack.c.h.bf16 %v2801_v5 }
 0x9c1   :  { %3576 = vmatpush3.msra.mxu0 %v2583_v6  ;;  %v2642_v6 = vunpack.c.l.bf16 %v2802_v2 }
 0x9c2   :  { %3577 = vmatprep.subr.mxu0 %v4114_v22 }
 0x9c3   :  { %3578 = vmatpush3.msra.mxu0 %v2582_v8  ;;  %v2148_v8 = vld [vmem:[#allocation10 + $0xd] ss:$0 sm:$0xff] }
 0x9c4   :  { %3579 = vmatprep.subr.mxu0 %v4114_v22 }
 0x9c5   :  { %3580 = vmatpush3.msra.mxu0 %v2579_v9 }
 0x9c6   :  { %3581 = vmatprep.subr.mxu0 %v4114_v22 }
 0x9c7   :  { %3582 = vmatpush3.msra.mxu0 %v2578_v11 }
 0x9c8   :  { %3583 = vmatprep.subr.mxu0 %v4114_v22 }
 0x9c9   :  { %3584 = vmatpush3.msra.mxu0 %v2575_v12 }
 0x9ca   :  { %3585 = vmatprep.subr.mxu0 %v4114_v22 }
 0x9cb   :  { %3586 = vmatpush3.msra.mxu0 %v2574_v18  ;;  %v2813_v18 = vld [vmem:[#allocation9 + $0x430] sm:$0xff]  }
 0x9cc   :  { %3587 = vmatprep.subr.mxu0 %v4114_v22  ;;  %v2690_v24 = vunpack.c.l.bf16 %v2813_v18 }
 0x9cd   :  { %3588 = vmatpush3.msra.mxu0 %v2571_v20 }
 0x9ce   :  { %3589 = vmatprep.subr.mxu0 %v4114_v22 }
 0x9cf   :  { %3590 = vmatpush3.msra.mxu0 %v2570_v21  ;;  %v2691_v21 = vunpack.c.h.bf16 %v2813_v18 }
 0x9d0   :  { %3629 = vmatprep.subr.mxu0 %v4114_v22 }
 0xa70   :  { %v1539_v14 = vpop.f32.mrf.mxu0 }
 0xa71   :  { %v1540_v15 = vadd.f32 %v2146_v13, %v1539_v14  ;;  %v2638_v13 = vunpack.c.l.bf16 %v2801_v5  ;;  %v2633_v14 = vld [vmem:[#allocation9 + $0x3c0] sm:$0xff]  }
 0xa72   :  { %v3523_v16 = vpop.f32.mrf.mxu0 }
 0xa73   :  { %v1543_v17 = vmax.f32 %v1540_v15, 0.0  ;;  %v2635_v15 = vunpack.c.h.bf16 %v2633_v14  ;;  %v2634_v16 = vunpack.c.l.bf16 %v2633_v14 }
 0xa75   :  { %3557 = vmatmul.mubr.f32.vlgmr.msra.gmra.mxu1 %v1543_v17  ;;  %v2814_v17 = vld [vmem:[#allocation9 + $0x438] sm:$0xff]  }
 0xa76   :  { %3626 = vmatprep.mubr.msk.f32.mxu1 %vm3896_vm0, %v4114_v22  ;;  %3595 = vmatpush3.msra.mxu1 %v2631_v25  ;;  %v2695_v19 = vunpack.c.h.bf16 %v2814_v17  ;;  %v2694_v20 = vunpack.c.l.bf16 %v2814_v17  ;;  %v2687_v25 = vunpack.c.h.bf16 %v2812_v23 }
 0xa77   :  { %3596 = vmatprep.subr.mxu1 %v4114_v22 }
 0xa78   :  { %3597 = vmatpush3.msra.mxu1 %v2630_v26  ;;  %v2811_v26 = vld [vmem:[#allocation9 + $0x420] sm:$0xff]  }
 0xa79   :  { %3598 = vmatprep.subr.mxu1 %v4114_v22  ;;  %v2683_v28 = vunpack.c.h.bf16 %v2811_v26 }
 0xa7a   :  { %3599 = vmatpush3.msra.mxu1 %v2627_v27  ;;  %v2686_v27 = vunpack.c.l.bf16 %v2812_v23 }
 0xa7b   :  { %3600 = vmatprep.subr.mxu1 %v4114_v22 }
 0xa7c   :  { %3601 = vmatpush3.msra.mxu1 %v2626_v29  ;;  %v2810_v29 = vld [vmem:[#allocation9 + $0x418] sm:$0xff]  }
 0xa7d   :  { %3602 = vmatprep.subr.mxu1 %v4114_v22  ;;  %v2679_v31 = vunpack.c.h.bf16 %v2810_v29 }
 0xa7e   :  { %3603 = vmatpush3.msra.mxu1 %v2623_v30  ;;  %v2682_v30 = vunpack.c.l.bf16 %v2811_v26 }
 0xa7f   :  { %3604 = vmatprep.subr.mxu1 %v4114_v22 }
 0xa80   :  { %3605 = vmatpush3.msra.mxu1 %v2622_v32  ;;  %v2809_v32 = vld [vmem:[#allocation9 + $0x410] sm:$0xff]  }
 0xa81   :  { %3606 = vmatprep.subr.mxu1 %v4114_v22  ;;  %v2675_v34 = vunpack.c.h.bf16 %v2809_v32 }
 0xa82   :  { %3607 = vmatpush3.msra.mxu1 %v2619_v33  ;;  %v2678_v33 = vunpack.c.l.bf16 %v2810_v29 }
 0xa83   :  { %3608 = vmatprep.subr.mxu1 %v4114_v22 }
 0xa84   :  { %3609 = vmatpush3.msra.mxu1 %v2618_v35  ;;  %v2808_v35 = vld [vmem:[#allocation9 + $0x408] sm:$0xff]  }
 0xa85   :  { %3610 = vmatprep.subr.mxu1 %v4114_v22  ;;  %v2671_v37 = vunpack.c.h.bf16 %v2808_v35 }
 0xa86   :  { %3611 = vmatpush3.msra.mxu1 %v2615_v36  ;;  %v2674_v36 = vunpack.c.l.bf16 %v2809_v32 }
 0xa87   :  { %3612 = vmatprep.subr.mxu1 %v4114_v22 }
 0xa88   :  { %3613 = vmatpush3.msra.mxu1 %v2614_v38  ;;  %v2149_v38 = vld [vmem:[#allocation10 + $0xe] ss:$0 sm:$0xff] }
 0xa89   :  { %3614 = vmatprep.subr.mxu1 %v4114_v22 }
 0xa8a   :  { %3615 = vmatpush3.msra.mxu1 %v2611_v39 }
 0xa8b   :  { %3616 = vmatprep.subr.mxu1 %v4114_v22 }
 0xa8c   :  { %3617 = vmatpush3.msra.mxu1 %v2610_v41 }
 0xa8d   :  { %3618 = vmatprep.subr.mxu1 %v4114_v22 }
 0xa8e   :  { %3619 = vmatpush3.msra.mxu1 %v2607_v42 }
 0xa8f   :  { %3620 = vmatprep.subr.mxu1 %v4114_v22 }
 0xa90   :  { %3621 = vmatpush3.msra.mxu1 %v2606_v48 }
 0xa91   :  { %3622 = vmatprep.subr.mxu1 %v4114_v22 }
 0xa92   :  { %3623 = vmatpush3.msra.mxu1 %v2603_v50 }
 0xa93   :  { %3624 = vmatprep.subr.mxu1 %v4114_v22 }
 0xa94   :  { %3625 = vmatpush3.msra.mxu1 %v2602_v51 }
 0xa95   :  { %3664 = vmatprep.subr.mxu1 %v4114_v22 }
 0xb35   :  { %v1648_v44 = vpop.f32.mrf.mxu1 }
 0xb36   :  { %v1649_v45 = vadd.f32 %v2147_v43, %v1648_v44  ;;  %v2670_v43 = vunpack.c.l.bf16 %v2808_v35  ;;  %v2665_v44 = vld [vmem:[#allocation9 + $0x400] sm:$0xff]  }
 0xb37   :  { %v3558_v46 = vpop.f32.mrf.mxu1 }
 0xb38   :  { %v1652_v47 = vmax.f32 %v1649_v45, 0.0  ;;  %v2667_v45 = vunpack.c.h.bf16 %v2665_v44  ;;  %v2666_v46 = vunpack.c.l.bf16 %v2665_v44 }
 0xb3a   :  { %3592 = vmatmul.mubr.f32.vlgmr.msra.gmra.mxu0 %v1652_v47  ;;  %v2150_v47 = vld [vmem:[#allocation10 + $0xf] ss:$0 sm:$0xff] }
 0xb3b   :  { %3661 = vmatprep.mubr.msk.f32.mxu0 %vm3896_vm0, %v4114_v22  ;;  %3630 = vmatpush3.msra.mxu0 %v2663_v53 }
 0xb3c   :  { %3631 = vmatprep.subr.mxu0 %v4114_v22 }
 0xb3d   :  { %3632 = vmatpush3.msra.mxu0 %v2662_v54 }
 0xb3e   :  { %3633 = vmatprep.subr.mxu0 %v4114_v22 }
 0xb3f   :  { %3634 = vmatpush3.msra.mxu0 %v2659_v55 }
 0xb40   :  { %3635 = vmatprep.subr.mxu0 %v4114_v22 }
 0xb41   :  { %3636 = vmatpush3.msra.mxu0 %v2658_v57 }
 0xb42   :  { %3637 = vmatprep.subr.mxu0 %v4114_v22 }
 0xb43   :  { %3638 = vmatpush3.msra.mxu0 %v2655_v58 }
 0xb44   :  { %3639 = vmatprep.subr.mxu0 %v4114_v22 }
 0xb45   :  { %3640 = vmatpush3.msra.mxu0 %v2654_v60 }
 0xb46   :  { %3641 = vmatprep.subr.mxu0 %v4114_v22 }
 0xb47   :  { %3642 = vmatpush3.msra.mxu0 %v2651_v61 }
 0xb48   :  { %3643 = vmatprep.subr.mxu0 %v4114_v22 }
 0xb49   :  { %3644 = vmatpush3.msra.mxu0 %v2650_v63 }
 0xb4a   :  { %3645 = vmatprep.subr.mxu0 %v4114_v22 }
 0xb4b   :  { %3646 = vmatpush3.msra.mxu0 %v2647_v1 }
 0xb4c   :  { %3647 = vmatprep.subr.mxu0 %v4114_v22 }
 0xb4d   :  { %3648 = vmatpush3.msra.mxu0 %v2646_v3 }
 0xb4e   :  { %3649 = vmatprep.subr.mxu0 %v4114_v22 }
 0xb4f   :  { %3650 = vmatpush3.msra.mxu0 %v2643_v4 }
 0xb50   :  { %3651 = vmatprep.subr.mxu0 %v4114_v22 }
 0xb51   :  { %3652 = vmatpush3.msra.mxu0 %v2642_v6 }
 0xb52   :  { %3653 = vmatprep.subr.mxu0 %v4114_v22 }
 0xb53   :  { %3654 = vmatpush3.msra.mxu0 %v2639_v7 }
 0xb54   :  { %3655 = vmatprep.subr.mxu0 %v4114_v22 }
 0xb55   :  { %3656 = vmatpush3.msra.mxu0 %v2638_v13 }
 0xb56   :  { %3657 = vmatprep.subr.mxu0 %v4114_v22 }
 0xb57   :  { %3658 = vmatpush3.msra.mxu0 %v2635_v15 }
 0xb58   :  { %3659 = vmatprep.subr.mxu0 %v4114_v22 }
 0xb59   :  { %3660 = vmatpush3.msra.mxu0 %v2634_v16 }
 0xbfa   :  { %v1757_v9 = vpop.f32.mrf.mxu0 }
 0xbfb   :  { %v1758_v10 = vadd.f32 %v2148_v8, %v1757_v9 }
 0xbfc   :  { %v3593_v11 = vpop.f32.mrf.mxu0 }
 0xbfd   :  { %v1761_v12 = vmax.f32 %v1758_v10, 0.0 }
 0xbff   :  { %3627 = vmatmul.mubr.f32.vlgmr.msra.gmra.mxu1 %v1761_v12 }
 0xc00   :  { %3696 = vmatprep.mubr.msk.f32.mxu1 %vm3896_vm0, %v4114_v22  ;;  %3665 = vmatpush3.msra.mxu1 %v2695_v19 }
 0xc01   :  { %3666 = vmatprep.subr.mxu1 %v4114_v22 }
 0xc02   :  { %3667 = vmatpush3.msra.mxu1 %v2694_v20 }
 0xc03   :  { %3668 = vmatprep.subr.mxu1 %v4114_v22 }
 0xc04   :  { %3669 = vmatpush3.msra.mxu1 %v2691_v21 }
 0xc05   :  { %3670 = vmatprep.subr.mxu1 %v4114_v22 }
 0xc06   :  { %3671 = vmatpush3.msra.mxu1 %v2690_v24 }
 0xc07   :  { %3672 = vmatprep.subr.mxu1 %v4114_v22 }
 0xc08   :  { %3673 = vmatpush3.msra.mxu1 %v2687_v25 }
 0xc09   :  { %3674 = vmatprep.subr.mxu1 %v4114_v22 }
 0xc0a   :  { %3675 = vmatpush3.msra.mxu1 %v2686_v27 }
 0xc0b   :  { %3676 = vmatprep.subr.mxu1 %v4114_v22 }
 0xc0c   :  { %3677 = vmatpush3.msra.mxu1 %v2683_v28 }
 0xc0d   :  { %3678 = vmatprep.subr.mxu1 %v4114_v22 }
 0xc0e   :  { %3679 = vmatpush3.msra.mxu1 %v2682_v30 }
 0xc0f   :  { %3680 = vmatprep.subr.mxu1 %v4114_v22 }
 0xc10   :  { %3681 = vmatpush3.msra.mxu1 %v2679_v31 }
 0xc11   :  { %3682 = vmatprep.subr.mxu1 %v4114_v22 }
 0xc12   :  { %3683 = vmatpush3.msra.mxu1 %v2678_v33 }
 0xc13   :  { %3684 = vmatprep.subr.mxu1 %v4114_v22 }
 0xc14   :  { %3685 = vmatpush3.msra.mxu1 %v2675_v34 }
 0xc15   :  { %3686 = vmatprep.subr.mxu1 %v4114_v22 }
 0xc16   :  { %3687 = vmatpush3.msra.mxu1 %v2674_v36 }
 0xc17   :  { %3688 = vmatprep.subr.mxu1 %v4114_v22 }
 0xc18   :  { %3689 = vmatpush3.msra.mxu1 %v2671_v37 }
 0xc19   :  { %3690 = vmatprep.subr.mxu1 %v4114_v22 }
 0xc1a   :  { %3691 = vmatpush3.msra.mxu1 %v2670_v43 }
 0xc1b   :  { %3692 = vmatprep.subr.mxu1 %v4114_v22 }
 0xc1c   :  { %3693 = vmatpush3.msra.mxu1 %v2667_v45 }
 0xc1d   :  { %3694 = vmatprep.subr.mxu1 %v4114_v22 }
 0xc1e   :  { %3695 = vmatpush3.msra.mxu1 %v2666_v46 }
 0xcbf   :  { %v1866_v39 = vpop.f32.mrf.mxu1 }
 0xcc0   :  { %v1867_v40 = vadd.f32 %v2149_v38, %v1866_v39 }
 0xcc1   :  { %v3628_v41 = vpop.f32.mrf.mxu1 }
 0xcc2   :  { %v1870_v42 = vmax.f32 %v1867_v40, 0.0 }
 0xcc4   :  { %3662 = vmatmul.mubr.f32.vlgmr.msra.gmra.mxu0 %v1870_v42 }
 0xd84   :  { %v1975_v48 = vpop.f32.mrf.mxu0 }
 0xd85   :  { %v1976_v49 = vadd.f32 %v2150_v47, %v1975_v48 }
 0xd86   :  { %v3663_v50 = vpop.f32.mrf.mxu0 }
 0xd87   :  { %v1979_v51 = vmax.f32 %v1976_v49, 0.0 }
 0xd89   :  { %3697 = vmatmul.mubr.f32.vlgmr.msra.gmra.mxu1 %v1979_v51 }
 0xd8a   :  { %3827 = shalt.err (!%p3824_p1)
}
 0xd8b   :  { %2110 = dma.vmem_to_hbm [thread:$0]  %s2108_s9, 128, %s4296_s7, [#allocation15]  }
 0xd8c   :  { %s3898_s13 = smov [#allocation16]  }
 0xd8d   :  { %s2117_s14 = sshll.u32 %s3898_s13, 4  ;;  %s2118_s14 = int_to_ptr.vmem [resolvable:$true] %s2117_s14 }
 0xd8e   :  { %s3836_s15 = scalar_lea.vmem %s2118_s14, 128  ;;  %p3841_p3 = scmp.lt.s32.totalorder %s2118_s14, %s2118_s14 }
 0xd8f   :  { %p3837_p2 = scmp.ne.s32.totalorder %s2118_s14, %s3836_s15  ;;  %p3842_p4 = scmp.lt.s32.totalorder %s3836_s15, %s3836_s15 }
 0xd91   :  { %p3843_p5 = por %p3842_p4, %p3841_p3 }
 0xd93   :  { %p3844_p6 = pnand %p3843_p5, %p3837_p2 }
 0xd95   :  { %3847 = shalt.err (!%p3844_p6)
}
 0xd96   :  { %2120 = dma.vmem_to_hbm [thread:$0]  %s2118_s14, 128, %s4297_s8, [#allocation15]   ;;  %v2151_v22 = vld [vmem:[#allocation10 + $0x10] ss:$0 sm:$0xff] }
 0xd97   :  { %s3899_s18 = smov [#allocation13]  }
 0xd98   :  { %s2097_s19 = sshll.u32 %s3899_s18, 4  ;;  %s2098_s19 = int_to_ptr.vmem [resolvable:$true] %s2097_s19 }
 0xd99   :  { %s3856_s7 = scalar_lea.vmem %s2098_s19, 128  ;;  %p3861_p8 = scmp.lt.s32.totalorder %s2098_s19, %s2098_s19 }
 0xd9a   :  { %p3857_p7 = scmp.ne.s32.totalorder %s2098_s19, %s3856_s7  ;;  %p3862_p9 = scmp.lt.s32.totalorder %s3856_s7, %s3856_s7 }
 0xd9c   :  { %p3863_p10 = por %p3862_p9, %p3861_p8 }
 0xd9e   :  { %p3864_p11 = pnand %p3863_p10, %p3857_p7 }
 0xe49   :  { %v2084_v0 = vpop.f32.mrf.mxu1 }
 0xe4a   :  { %v2085_v52 = vadd.f32 %v2151_v22, %v2084_v0 }
 0xe4b   :  { %v3698_v53 = vpop.f32.mrf.mxu1 }
 0xe4c   :  { %2088 = vst [vmem:[#allocation13] sm:$0xff] %v2085_v52 }
 0xe4d   :  { %3867 = shalt.err (!%p3864_p11)
}
 0xe4e   :  { %2100 = dma.vmem_to_hbm [thread:$0]  %s2098_s19, 128, %s4295_s6, [#allocation6]  }
 0xe4f   :  { %3882 = dma.done.wait [#allocation6], 128  }
 0xe50   :  { %3883 = vsyncadd [#allocation6], 4294967168 }
 0xe51   :  { %3884 = dma.done.wait [#allocation15], 256  }
 0xe52   :  { %3885 = vsyncadd [#allocation15], 4294967040 }
 0xe53   :  { %2130 = vsyncpa [#allocation5], 1 }
 0xe54   :  { %2131 = vsyncpa [#allocation8], 1 }
 0xe55   :  { %2132 = vsyncpa [#allocation11], 1 }
 0xe56   :  { %2133 = vsyncpa [#allocation6], 1 }
 0xe57   :  { %2134 = vsyncpa [#allocation15], 1 }

</bundles_post_ra>
